<compile_context>
chip_gen: v7x
topology: tpu7x:2x2x1
jax: 0.10.0
libtpu: 0.0.40
codegen_flags: <defaults>
</compile_context>

<pallas_src>
import jax
import jax.numpy as jnp
import numpy as np
from jax.experimental import pallas as pl
from jax.experimental.pallas import tpu as pltpu

EPS = 1e-5
LANES = 128


def _round_up(x, m=LANES):
    return ((x + m - 1) // m) * m


# -------------------- fused kernel --------------------

def _make_fused_kernel(dims, last_dims, H):
    """dims: per 3x3 block (wc_in_pad, wc_out_pad); last_dims: same for the 1x1 conv."""
    L = len(dims)

    def kernel(x_ref, *refs):
        layer_refs = refs[:2 * L]
        bl_ref = refs[2 * L]           # (wc_lin, wc_lout) bf16  (1x1 conv, BN folded)
        sl_ref = refs[2 * L + 1]       # (1, wc_lout) f32
        out_ref = refs[2 * L + 2]      # (BT, H, wc_lout) f32
        pad_ref = refs[2 * L + 3]      # (BT, H+2, wc_max) bf16 scratch

        BT = pad_ref.shape[0]
        wc_max = pad_ref.shape[2]
        wc0 = x_ref.shape[2]
        M = BT * H

        # Halo rows (0 and H+1) must read as zero.  They are never written by any
        # layer, but the scratch persists across grid steps (and each TensorCore
        # has its own copy), so cheaply re-zero just these two row-slabs per step.
        zrow = jnp.zeros((BT, 1, wc_max), pad_ref.dtype)
        pad_ref[:, pl.ds(0, 1), :] = zrow
        pad_ref[:, pl.ds(H + 1, 1), :] = zrow

        # Load the fused lane-dense input (bf16) into the interior rows.
        pad_ref[:, pl.ds(1, H), :wc0] = x_ref[...]

        # ---- 3x3 conv blocks: conv + folded BN + ReLU, fully in VMEM ----
        for l in range(L):                               # static unroll over layers
            B_ref = layer_refs[2 * l]                    # (3*wc_in, wc_out) bf16 bands
            s_ref = layer_refs[2 * l + 1]                # (1, wc_out) f32 bias+BN shift
            wc_in, wc_out = dims[l]
            # Three H-shifted row slabs concatenated along lanes -> one K=3*wc_in matmul
            # (no im2col, W-shift + W zero-pad are baked into the band matrices).
            lhs = jnp.concatenate(
                [pad_ref[:, pl.ds(ky, H), :wc_in] for ky in range(3)], axis=-1
            ).reshape(M, 3 * wc_in)
            acc = jnp.dot(lhs, B_ref[...], preferred_element_type=jnp.float32)
            h = jnp.maximum(acc + s_ref[...], 0.0)       # folded conv-bias + BN, ReLU (f32)
            pad_ref[:, pl.ds(1, H), :wc_out] = (
                h.reshape(BT, H, wc_out).astype(pad_ref.dtype))

        # ---- last block: 1x1 conv + folded BN + residual add + ReLU ----
        wc_lin, wc_lout = last_dims
        xin = pad_ref[:, pl.ds(1, H), :wc_lin].reshape(M, wc_lin)
        y = jnp.dot(xin, bl_ref[...], preferred_element_type=jnp.float32) + sl_ref[...]
        # Residual: re-read the input block (fresh vld, keeps vreg pressure low).
        y = y.reshape(BT, H, wc_lout) + x_ref[...].astype(jnp.float32)
        out_ref[...] = jnp.maximum(y, 0.0).astype(out_ref.dtype)

    return kernel


# -------------------- pallas_call wrapper --------------------

def _const_spec(shape):
    """Grid-invariant operand: constant index_map + single buffering."""
    ndim = len(shape)
    imap = lambda n: (0,) * ndim
    try:
        return pl.BlockSpec(shape, imap, pipeline_mode=pl.Buffered(1))
    except TypeError:   # older BlockSpec signature without pipeline_mode
        return pl.BlockSpec(shape, imap)


def _pick_b_tile(N, H, target_m=128):
    """Largest divisor of N with B_TILE*H >= target_m rows per matmul, but keep
    >= 2 grid steps when possible so megacore (v7x) can shard the batch axis."""
    want = max(1, (target_m + H - 1) // H)
    bt = 1
    for d in range(1, N + 1):
        if N % d == 0 and d <= want:
            bt = d
    if N // bt < 2 and bt > 1:
        for d in range(bt - 1, 0, -1):
            if N % d == 0 and N // d >= 2:
                bt = d
                break
    return bt


def _vmem_limit_bytes(weight_bytes, x_tile_bytes, out_tile_bytes, scratch_bytes):
    try:
        cap = int(pltpu.get_tpu_info().vmem_capacity_bytes)
    except Exception:
        cap = 64 << 20                       # conservative: v7x per-TensorCore VMEM
    usable = max(cap - (16 << 20), 32 << 20)  # leave headroom for compiler scratch
    needed = (weight_bytes                    # single-buffered weights/shifts
              + 2 * (x_tile_bytes + out_tile_bytes)  # double-buffered act tiles
              + scratch_bytes)
    return int(min(max(2 * needed + (4 << 20), 16 << 20), usable))


def _fused_residual_block_call(x_fused, band_ws, shifts, B_last, shift_last, dims, H):
    N, _, wc0_p = x_fused.shape
    wc_lin_p, wc_lout_p = B_last.shape
    wc_max_p = max([wc0_p, wc_lout_p] + [d for pair in dims for d in pair])

    B_TILE = _pick_b_tile(N, H)
    grid = (N // B_TILE,)

    in_specs = [pl.BlockSpec((B_TILE, H, wc0_p), lambda n: (n, 0, 0))]
    operands = [x_fused]
    for Bw, s in zip(band_ws, shifts):
        in_specs += [_const_spec(Bw.shape), _const_spec(s.shape)]
        operands += [Bw, s]
    in_specs += [_const_spec(B_last.shape), _const_spec(shift_last.shape)]
    operands += [B_last, shift_last]

    kernel = _make_fused_kernel(dims, (wc_lin_p, wc_lout_p), H)

    w_bytes = sum(int(np.prod(a.shape)) * a.dtype.itemsize for a in operands[1:])
    x_tile_bytes = B_TILE * H * wc0_p * 2          # bf16 input tile
    out_tile_bytes = B_TILE * H * wc_lout_p * 4    # f32 output tile
    scratch_bytes = B_TILE * (H + 2) * wc_max_p * 2
    vmem_limit = _vmem_limit_bytes(w_bytes, x_tile_bytes, out_tile_bytes, scratch_bytes)

    return pl.pallas_call(
        kernel,
        out_shape=jax.ShapeDtypeStruct((N, H, wc_lout_p), jnp.float32),
        grid=grid,
        in_specs=in_specs,
        out_specs=pl.BlockSpec((B_TILE, H, wc_lout_p), lambda n: (n, 0, 0)),
        scratch_shapes=[pltpu.VMEM((B_TILE, H + 2, wc_max_p), jnp.bfloat16)],
        compiler_params=pltpu.CompilerParams(
            dimension_semantics=("parallel",),     # megacore sharding over batch tiles
            vmem_limit_bytes=vmem_limit),
    )(*operands)


# -------------------- parameters (deterministic, PyTorch shape conventions) --------------------

def init_params(key, channel_list):
    def one_layer(key, cin, cout, ksize):
        k = jax.random.split(key, 6)
        w = 0.1 * jax.random.normal(k[0], (cout, cin, ksize, ksize), jnp.float32)  # OIHW
        b = 0.1 * jax.random.normal(k[1], (cout,), jnp.float32)
        gamma = 1.0 + 0.1 * jax.random.normal(k[2], (cout,), jnp.float32)
        beta = 0.1 * jax.random.normal(k[3], (cout,), jnp.float32)
        mean = 0.1 * jax.random.normal(k[4], (cout,), jnp.float32)
        var = 1.0 + jnp.abs(jax.random.normal(k[5], (cout,), jnp.float32))
        return (w, b, gamma, beta, mean, var)

    blocks = []
    for i in range(len(channel_list) - 1):
        key, sub = jax.random.split(key)
        blocks.append(one_layer(sub, channel_list[i], channel_list[i + 1], 3))
    key, sub = jax.random.split(key)
    last = one_layer(sub, channel_list[-2], channel_list[-1], 1)
    return {"blocks": blocks, "last": last}


# -------------------- weight prep: fold BN + bake W-shift into K-stacked band matrices --------------------

def _band_weights_3x3(w_oihw, scale, W, wc_in_p, wc_out_p):
    """Stacked band matrix (3*wc_in_p, wc_out_p) bf16:
    band[ky][wi*Cin+ci, wo*Cout+co] = w[co,ci,ky,kx]*scale[co] with kx = wi-wo+1
    (zero outside the band / the board / the lane padding)."""
    w_eff = jnp.transpose(w_oihw, (2, 3, 1, 0)) * scale        # (3,3,Cin,Cout), scaled over co
    bands = []
    for ky in range(3):
        b = sum(jnp.kron(jnp.eye(W, k=1 - kx, dtype=w_eff.dtype), w_eff[ky, kx])
                for kx in range(3))                            # (W*Cin, W*Cout)
        b = jnp.pad(b, ((0, wc_in_p - b.shape[0]), (0, wc_out_p - b.shape[1])))
        bands.append(b)
    return jnp.concatenate(bands, axis=0).astype(jnp.bfloat16)  # (3*wc_in_p, wc_out_p)


def _folded_shift(b, gamma, beta, mean, var, W, wc_out_p):
    scale = gamma / jnp.sqrt(var + EPS)
    shift = b * scale + beta - mean * scale                    # folded conv-bias + BN shift
    shift_fused = jnp.tile(shift, W)                           # lane order: w*Cout + co
    shift_fused = jnp.pad(shift_fused, (0, wc_out_p - shift_fused.shape[0]))
    return scale, shift_fused.reshape(1, -1).astype(jnp.float32)


# -------------------- full forward (matches ResidualConvBlock.forward, inference BN) --------------------

def residual_conv_block_forward(x_nchw, params):
    N, C0, H, W = x_nchw.shape
    blocks, last = params["blocks"], params["last"]
    cout_last = last[0].shape[0]
    assert last[0].shape[1] == blocks[-1][0].shape[0], \
        "last_block input channels must equal last conv block output channels"
    assert cout_last == C0, "residual add requires channel_list[0] == channel_list[-1]"

    wc0 = W * C0
    wc0_p = _round_up(wc0)

    # NCHW -> NHWC -> fused lane-dense (N, H, W*C), zero-padded to 128 lanes, bf16.
    x_fused = jnp.transpose(x_nchw, (0, 2, 3, 1)).reshape(N, H, wc0)
    x_fused = jnp.pad(x_fused, ((0, 0), (0, 0), (0, wc0_p - wc0))).astype(jnp.bfloat16)

    band_ws, shifts, dims = [], [], []
    for (w, b, gamma, beta, mean, var) in blocks:
        cout, cin = w.shape[0], w.shape[1]
        wc_in_p, wc_out_p = _round_up(W * cin), _round_up(W * cout)
        scale, shift_fused = _folded_shift(b, gamma, beta, mean, var, W, wc_out_p)
        band_ws.append(_band_weights_3x3(w, scale, W, wc_in_p, wc_out_p))
        shifts.append(shift_fused)
        dims.append((wc_in_p, wc_out_p))

    (w, b, gamma, beta, mean, var) = last
    wc_lin_p = _round_up(W * w.shape[1])
    wc_lout_p = _round_up(W * cout_last)
    scale, shift_last = _folded_shift(b, gamma, beta, mean, var, W, wc_lout_p)
    w1_eff = jnp.transpose(w[:, :, 0, 0], (1, 0)) * scale             # (Cin,Cout), BN-scaled
    B_last = jnp.kron(jnp.eye(W, dtype=w1_eff.dtype), w1_eff)         # block-diagonal 1x1 conv
    B_last = jnp.pad(B_last, ((0, wc_lin_p - B_last.shape[0]),
                              (0, wc_lout_p - B_last.shape[1]))).astype(jnp.bfloat16)

    out_fused = _fused_residual_block_call(x_fused, band_ws, shifts, B_last,
                                           shift_last, dims, H)
    out = out_fused[:, :, :W * cout_last].reshape(N, H, W, cout_last)
    return jnp.transpose(out, (0, 3, 1, 2))                           # NHWC -> NCHW


# -------------------- pure-JAX reference (for correctness check) --------------------

def reference_forward(x_nchw, params):
    def bn(h, gamma, beta, mean, var):
        return ((h - mean[None, :, None, None])
                / jnp.sqrt(var + EPS)[None, :, None, None]
                * gamma[None, :, None, None] + beta[None, :, None, None])

    h = x_nchw
    res = x_nchw
    for (w, b, gamma, beta, mean, var) in params["blocks"]:
        h = jax.lax.conv_general_dilated(
            h, w, (1, 1), ((1, 1), (1, 1)),
            dimension_numbers=("NCHW", "OIHW", "NCHW"),
            precision=jax.lax.Precision.HIGHEST)
        h = h + b[None, :, None, None]
        h = jnp.maximum(bn(h, gamma, beta, mean, var), 0.0)
    (w, b, gamma, beta, mean, var) = params["last"]
    h = jax.lax.conv_general_dilated(
        h, w, (1, 1), ((0, 0), (0, 0)),
        dimension_numbers=("NCHW", "OIHW", "NCHW"),
        precision=jax.lax.Precision.HIGHEST)
    h = h + b[None, :, None, None]
    h = bn(h, gamma, beta, mean, var)
    return jnp.maximum(h + res, 0.0)


# -------------------- main --------------------

if __name__ == "__main__":
    # channel_list must satisfy channel_list[-2] == channel_list[-1] (last_block input)
    # and channel_list[0] == channel_list[-1] (residual add), as in the PyTorch module.
    channel_list = [8, 8, 8]
    N, H, W = 16, 16, 16          # W*C = 128 lanes; B_TILE=8 -> M = 128 rows, 2 grid steps

    key = jax.random.PRNGKey(0)
    k_x, k_p = jax.random.split(key)
    x = jax.random.normal(k_x, (N, channel_list[0], H, W), jnp.float32)  # NCHW like PyTorch
    params = init_params(k_p, channel_list)

    out = jax.block_until_ready(residual_conv_block_forward(x, params))
    ref = jax.block_until_ready(reference_forward(x, params))

    assert out.shape == (N, channel_list[-1], H, W)
    # bf16 MXU operands (f32 accumulation) vs. the f32 HIGHEST reference -> loosened tolerance.
    np.testing.assert_allclose(np.asarray(out), np.asarray(ref), rtol=2e-2, atol=5e-2)
    print("KERNEL_OK")
</pallas_src>

<mosaic_0001>
module attributes {stable_mosaic.version = 11 : i64} {
  func.func @kernel(%arg0: i32, %arg1: memref<8x16x128xbf16, #tpu.memory_space<vmem>>, %arg2: memref<384x128xbf16, #tpu.memory_space<vmem>>, %arg3: memref<1x128xf32, #tpu.memory_space<vmem>>, %arg4: memref<384x128xbf16, #tpu.memory_space<vmem>>, %arg5: memref<1x128xf32, #tpu.memory_space<vmem>>, %arg6: memref<128x128xbf16, #tpu.memory_space<vmem>>, %arg7: memref<1x128xf32, #tpu.memory_space<vmem>>, %arg8: memref<8x16x128xf32, #tpu.memory_space<vmem>>, %arg9: memref<8x18x128xbf16, #tpu.memory_space<vmem>>) attributes {dimension_semantics = [#tpu.dimension_semantics<parallel>], iteration_bounds = array<i64: 2>, scalar_prefetch = 0 : i64, scratch_operands = 1 : i64, tpu.core_type = #tpu.core_type<tc>, window_params = [{transform_indices = @transform_0, window_bounds = array<i64: 8, 16, 128>}, {pipeline_mode = #tpu.pipeline_mode<synchronous>, transform_indices = @transform_1, window_bounds = array<i64: 384, 128>}, {pipeline_mode = #tpu.pipeline_mode<synchronous>, transform_indices = @transform_2, window_bounds = array<i64: 1, 128>}, {pipeline_mode = #tpu.pipeline_mode<synchronous>, transform_indices = @transform_3, window_bounds = array<i64: 384, 128>}, {pipeline_mode = #tpu.pipeline_mode<synchronous>, transform_indices = @transform_4, window_bounds = array<i64: 1, 128>}, {pipeline_mode = #tpu.pipeline_mode<synchronous>, transform_indices = @transform_5, window_bounds = array<i64: 128, 128>}, {pipeline_mode = #tpu.pipeline_mode<synchronous>, transform_indices = @transform_6, window_bounds = array<i64: 1, 128>}, {transform_indices = @transform_7, window_bounds = array<i64: 8, 16, 128>}]} {
    %cst = arith.constant 0.000000e+00 : bf16
    %0 = vector.broadcast %cst : bf16 to vector<8x1x128xbf16>
    %c0 = arith.constant 0 : index
    %c0_0 = arith.constant 0 : index
    %c0_1 = arith.constant 0 : index
    %1 = vector.load %arg9[%c0, %c0_0, %c0_1] : memref<8x18x128xbf16, #tpu.memory_space<vmem>>, vector<8x1x128xbf16>
    tpu.vector_store %arg9[%c0, %c0_0, %c0_1], %0 {strides = array<i32>} : memref<8x18x128xbf16, #tpu.memory_space<vmem>>, vector<8x1x128xbf16>,
    %c0_2 = arith.constant 0 : index
    %c17 = arith.constant 17 : index
    %c0_3 = arith.constant 0 : index
    %2 = vector.load %arg9[%c0_2, %c17, %c0_3] : memref<8x18x128xbf16, #tpu.memory_space<vmem>>, vector<8x1x128xbf16>
    tpu.vector_store %arg9[%c0_2, %c17, %c0_3], %0 {strides = array<i32>} : memref<8x18x128xbf16, #tpu.memory_space<vmem>>, vector<8x1x128xbf16>,
    %c0_4 = arith.constant 0 : index
    %c0_5 = arith.constant 0 : index
    %c0_6 = arith.constant 0 : index
    %3 = vector.load %arg1[%c0_4, %c0_5, %c0_6] : memref<8x16x128xbf16, #tpu.memory_space<vmem>>, vector<8x16x128xbf16>
    %c0_7 = arith.constant 0 : index
    %c1 = arith.constant 1 : index
    %c0_8 = arith.constant 0 : index
    %4 = vector.load %arg9[%c0_7, %c1, %c0_8] : memref<8x18x128xbf16, #tpu.memory_space<vmem>>, vector<8x16x128xbf16>
    tpu.vector_store %arg9[%c0_7, %c1, %c0_8], %3 {strides = array<i32>} : memref<8x18x128xbf16, #tpu.memory_space<vmem>>, vector<8x16x128xbf16>,
    %c0_9 = arith.constant 0 : index
    %c0_10 = arith.constant 0 : index
    %c0_11 = arith.constant 0 : index
    %5 = vector.load %arg9[%c0_9, %c0_10, %c0_11] : memref<8x18x128xbf16, #tpu.memory_space<vmem>>, vector<8x16x128xbf16>
    %c0_12 = arith.constant 0 : index
    %c1_13 = arith.constant 1 : index
    %c0_14 = arith.constant 0 : index
    %6 = vector.load %arg9[%c0_12, %c1_13, %c0_14] : memref<8x18x128xbf16, #tpu.memory_space<vmem>>, vector<8x16x128xbf16>
    %c0_15 = arith.constant 0 : index
    %c2 = arith.constant 2 : index
    %c0_16 = arith.constant 0 : index
    %7 = vector.load %arg9[%c0_15, %c2, %c0_16] : memref<8x18x128xbf16, #tpu.memory_space<vmem>>, vector<8x16x128xbf16>
    %8 = tpu.concatenate %5, %6, %7 in 2 : vector<8x16x128xbf16>, vector<8x16x128xbf16>, vector<8x16x128xbf16> -> vector<8x16x384xbf16>
    %9 = vector.shape_cast %8 : vector<8x16x384xbf16> to vector<128x384xbf16>
    %c0_17 = arith.constant 0 : index
    %c0_18 = arith.constant 0 : index
    %10 = vector.load %arg2[%c0_17, %c0_18] : memref<384x128xbf16, #tpu.memory_space<vmem>>, vector<384x128xbf16>
    %cst_19 = arith.constant dense<0.000000e+00> : vector<128x128xf32>
    %11 = tpu.matmul %9, %10, %cst_19 {dimension_numbers = #tpu.dot_dimension_numbers<[1], [0], [0], [1], [0, 0, 1, 1], [], []>} : vector<128x384xbf16>, vector<384x128xbf16>, vector<128x128xf32> -> vector<128x128xf32>
    %c0_20 = arith.constant 0 : index
    %c0_21 = arith.constant 0 : index
    %12 = vector.load %arg3[%c0_20, %c0_21] : memref<1x128xf32, #tpu.memory_space<vmem>>, vector<1x128xf32>
    %13 = vector.broadcast %12 : vector<1x128xf32> to vector<128x128xf32>
    %14 = arith.addf %11, %13 : vector<128x128xf32>
    %cst_22 = arith.constant 0.000000e+00 : f32
    %15 = vector.broadcast %cst_22 : f32 to vector<128x128xf32>
    %16 = arith.maximumf %14, %15 : vector<128x128xf32>
    %17 = vector.shape_cast %16 : vector<128x128xf32> to vector<8x16x128xf32>
    %18 = arith.truncf %17 : vector<8x16x128xf32> to vector<8x16x128xbf16>
    %c0_23 = arith.constant 0 : index
    %c1_24 = arith.constant 1 : index
    %c0_25 = arith.constant 0 : index
    %19 = vector.load %arg9[%c0_23, %c1_24, %c0_25] : memref<8x18x128xbf16, #tpu.memory_space<vmem>>, vector<8x16x128xbf16>
    tpu.vector_store %arg9[%c0_23, %c1_24, %c0_25], %18 {strides = array<i32>} : memref<8x18x128xbf16, #tpu.memory_space<vmem>>, vector<8x16x128xbf16>,
    %c0_26 = arith.constant 0 : index
    %c0_27 = arith.constant 0 : index
    %c0_28 = arith.constant 0 : index
    %20 = vector.load %arg9[%c0_26, %c0_27, %c0_28] : memref<8x18x128xbf16, #tpu.memory_space<vmem>>, vector<8x16x128xbf16>
    %c0_29 = arith.constant 0 : index
    %c1_30 = arith.constant 1 : index
    %c0_31 = arith.constant 0 : index
    %21 = vector.load %arg9[%c0_29, %c1_30, %c0_31] : memref<8x18x128xbf16, #tpu.memory_space<vmem>>, vector<8x16x128xbf16>
    %c0_32 = arith.constant 0 : index
    %c2_33 = arith.constant 2 : index
    %c0_34 = arith.constant 0 : index
    %22 = vector.load %arg9[%c0_32, %c2_33, %c0_34] : memref<8x18x128xbf16, #tpu.memory_space<vmem>>, vector<8x16x128xbf16>
    %23 = tpu.concatenate %20, %21, %22 in 2 : vector<8x16x128xbf16>, vector<8x16x128xbf16>, vector<8x16x128xbf16> -> vector<8x16x384xbf16>
    %24 = vector.shape_cast %23 : vector<8x16x384xbf16> to vector<128x384xbf16>
    %c0_35 = arith.constant 0 : index
    %c0_36 = arith.constant 0 : index
    %25 = vector.load %arg4[%c0_35, %c0_36] : memref<384x128xbf16, #tpu.memory_space<vmem>>, vector<384x128xbf16>
    %cst_37 = arith.constant dense<0.000000e+00> : vector<128x128xf32>
    %26 = tpu.matmul %24, %25, %cst_37 {dimension_numbers = #tpu.dot_dimension_numbers<[1], [0], [0], [1], [0, 0, 1, 1], [], []>} : vector<128x384xbf16>, vector<384x128xbf16>, vector<128x128xf32> -> vector<128x128xf32>
    %c0_38 = arith.constant 0 : index
    %c0_39 = arith.constant 0 : index
    %27 = vector.load %arg5[%c0_38, %c0_39] : memref<1x128xf32, #tpu.memory_space<vmem>>, vector<1x128xf32>
    %28 = vector.broadcast %27 : vector<1x128xf32> to vector<128x128xf32>
    %29 = arith.addf %26, %28 : vector<128x128xf32>
    %cst_40 = arith.constant 0.000000e+00 : f32
    %30 = vector.broadcast %cst_40 : f32 to vector<128x128xf32>
    %31 = arith.maximumf %29, %30 : vector<128x128xf32>
    %32 = vector.shape_cast %31 : vector<128x128xf32> to vector<8x16x128xf32>
    %33 = arith.truncf %32 : vector<8x16x128xf32> to vector<8x16x128xbf16>
    %c0_41 = arith.constant 0 : index
    %c1_42 = arith.constant 1 : index
    %c0_43 = arith.constant 0 : index
    %34 = vector.load %arg9[%c0_41, %c1_42, %c0_43] : memref<8x18x128xbf16, #tpu.memory_space<vmem>>, vector<8x16x128xbf16>
    tpu.vector_store %arg9[%c0_41, %c1_42, %c0_43], %33 {strides = array<i32>} : memref<8x18x128xbf16, #tpu.memory_space<vmem>>, vector<8x16x128xbf16>,
    %c0_44 = arith.constant 0 : index
    %c1_45 = arith.constant 1 : index
    %c0_46 = arith.constant 0 : index
    %35 = vector.load %arg9[%c0_44, %c1_45, %c0_46] : memref<8x18x128xbf16, #tpu.memory_space<vmem>>, vector<8x16x128xbf16>
    %36 = vector.shape_cast %35 : vector<8x16x128xbf16> to vector<128x128xbf16>
    %c0_47 = arith.constant 0 : index
    %c0_48 = arith.constant 0 : index
    %37 = vector.load %arg6[%c0_47, %c0_48] : memref<128x128xbf16, #tpu.memory_space<vmem>>, vector<128x128xbf16>
    %cst_49 = arith.constant dense<0.000000e+00> : vector<128x128xf32>
    %38 = tpu.matmul %36, %37, %cst_49 {dimension_numbers = #tpu.dot_dimension_numbers<[1], [0], [0], [1], [0, 0, 1, 1], [], []>} : vector<128x128xbf16>, vector<128x128xbf16>, vector<128x128xf32> -> vector<128x128xf32>
    %c0_50 = arith.constant 0 : index
    %c0_51 = arith.constant 0 : index
    %39 = vector.load %arg7[%c0_50, %c0_51] : memref<1x128xf32, #tpu.memory_space<vmem>>, vector<1x128xf32>
    %40 = vector.broadcast %39 : vector<1x128xf32> to vector<128x128xf32>
    %41 = arith.addf %38, %40 : vector<128x128xf32>
    %42 = vector.shape_cast %41 : vector<128x128xf32> to vector<8x16x128xf32>
    %c0_52 = arith.constant 0 : index
    %c0_53 = arith.constant 0 : index
    %c0_54 = arith.constant 0 : index
    %43 = vector.load %arg1[%c0_52, %c0_53, %c0_54] : memref<8x16x128xbf16, #tpu.memory_space<vmem>>, vector<8x16x128xbf16>
    %44 = arith.extf %43 : vector<8x16x128xbf16> to vector<8x16x128xf32>
    %45 = arith.addf %42, %44 : vector<8x16x128xf32>
    %cst_55 = arith.constant 0.000000e+00 : f32
    %46 = vector.broadcast %cst_55 : f32 to vector<8x16x128xf32>
    %47 = arith.maximumf %45, %46 : vector<8x16x128xf32>
    %c0_56 = arith.constant 0 : index
    %c0_57 = arith.constant 0 : index
    %c0_58 = arith.constant 0 : index
    %48 = vector.load %arg8[%c0_56, %c0_57, %c0_58] : memref<8x16x128xf32, #tpu.memory_space<vmem>>, vector<8x16x128xf32>
    tpu.vector_store %arg8[%c0_56, %c0_57, %c0_58], %47 {strides = array<i32>} : memref<8x16x128xf32, #tpu.memory_space<vmem>>, vector<8x16x128xf32>,
    return
  }
  func.func @transform_0(%arg0: i32) -> (i32, i32, i32) {
    %c0_i32 = arith.constant 0 : i32
    %c0_i32_0 = arith.constant 0 : i32
    %c0_i32_1 = arith.constant 0 : i32
    return %arg0, %c0_i32, %c0_i32_0 : i32, i32, i32
  }
  func.func @transform_1(%arg0: i32) -> (i32, i32) {
    %c0_i32 = arith.constant 0 : i32
    %c0_i32_0 = arith.constant 0 : i32
    %c0_i32_1 = arith.constant 0 : i32
    return %c0_i32, %c0_i32_0 : i32, i32
  }
  func.func @transform_2(%arg0: i32) -> (i32, i32) {
    %c0_i32 = arith.constant 0 : i32
    %c0_i32_0 = arith.constant 0 : i32
    %c0_i32_1 = arith.constant 0 : i32
    return %c0_i32, %c0_i32_0 : i32, i32
  }
  func.func @transform_3(%arg0: i32) -> (i32, i32) {
    %c0_i32 = arith.constant 0 : i32
    %c0_i32_0 = arith.constant 0 : i32
    %c0_i32_1 = arith.constant 0 : i32
    return %c0_i32, %c0_i32_0 : i32, i32
  }
  func.func @transform_4(%arg0: i32) -> (i32, i32) {
    %c0_i32 = arith.constant 0 : i32
    %c0_i32_0 = arith.constant 0 : i32
    %c0_i32_1 = arith.constant 0 : i32
    return %c0_i32, %c0_i32_0 : i32, i32
  }
  func.func @transform_5(%arg0: i32) -> (i32, i32) {
    %c0_i32 = arith.constant 0 : i32
    %c0_i32_0 = arith.constant 0 : i32
    %c0_i32_1 = arith.constant 0 : i32
    return %c0_i32, %c0_i32_0 : i32, i32
  }
  func.func @transform_6(%arg0: i32) -> (i32, i32) {
    %c0_i32 = arith.constant 0 : i32
    %c0_i32_0 = arith.constant 0 : i32
    %c0_i32_1 = arith.constant 0 : i32
    return %c0_i32, %c0_i32_0 : i32, i32
  }
  func.func @transform_7(%arg0: i32) -> (i32, i32, i32) {
    %c0_i32 = arith.constant 0 : i32
    %c0_i32_0 = arith.constant 0 : i32
    %c0_i32_1 = arith.constant 0 : i32
    return %arg0, %c0_i32, %c0_i32_0 : i32, i32, i32
  }
}

</mosaic_0001>

<bundles_post_ra>
// kernel: tpu_custom_call.1
= control target key start
LH: loop header
LB: loop body
LE: loop exit
PB: predicated region body
PF: predicated region fallthrough
CT: control target
= control target key end

     0   :  { %12 = vsyncpa [#allocation4], 0  ;;  %s4849_s0 = inlined_call_operand.hbm [shape: bf16[16,16,128], index: 0, kind: input, shape index: {}]   ;;  %s4850_s1 = inlined_call_operand.hbm [shape: bf16[384,128], index: 1, kind: input, shape index: {}]   ;;  %s4851_s2 = inlined_call_operand.vmem [shape: f32[1,128], index: 2, kind: input, shape index: {}]   ;;  %s4852_s3 = inlined_call_operand.hbm [shape: bf16[384,128], index: 3, kind: input, shape index: {}]   ;;  %s4853_s4 = inlined_call_operand.vmem [shape: f32[1,128], index: 4, kind: input, shape index: {}]   ;;  %s4854_s5 = inlined_call_operand.hbm [shape: bf16[128,128], index: 5, kind: input, shape index: {}]   ;;  %s4855_s6 = inlined_call_operand.vmem [shape: f32[1,128], index: 6, kind: input, shape index: {}]   ;;  %s4856_s7 = inlined_call_operand.hbm [shape: f32[16,16,128], index: 7, kind: output, shape index: {}]  }
   0x1   :  { %14 = vsyncpa [#allocation4 + $0x1], 0 }
   0x2   :  { %15 = vsyncpa [#allocation7], 0 }
   0x3   :  { %16 = vsyncpa [#allocation10], 0 }
   0x4   :  { %17 = vsyncpa [#allocation5], 0 }
   0x5   :  { %19 = vsyncpa [#allocation5 + $0x1], 0  ;;  %s4080_s24 = smov 0   ;;  %s4082_s25 = smov 0  }
   0x6   :  { %s4084_s26 = smov 0   ;;  %s4086_s27 = smov 0  }
   0x7 LB: > { %s4101_s28 = sadd.s32 4294967295, %s4029_s27   ;;  %s3124_s29 = sadd.s32 4294967294, %s4029_s27   ;;  %s4029_s27 = sphi %s4086_s27, %s4892_s27   ;;  %s4025_s26 = sphi %s4084_s26, %s4891_s26   ;;  %s4021_s25 = sphi %s4082_s25, %s4890_s25   ;;  %s4017_s24 = sphi %s4080_s24, %s4889_s24  }
   0x8   : > { %p45_p0 = scmp.ne.s32.totalorder %s4021_s25, %s4017_s24  ;;  %p4857_p1 = scmp.eq.s32.totalorder %s4101_s28, 0 }
   0x9   : > { %p201_p3 = scmp.eq.s32.totalorder %s3124_s29, 1  ;;  %p3125_p5 = scmp.ge.s32.totalorder %s4029_s27, 1 }
   0xa   : > { %p4110_p4 = por %p4857_p1, %p45_p0  ;;  %p208_p7 = scmp.lt.s32.totalorder %s4029_s27, 3 }
   0xb   : > { %p4115_p6 = por %p201_p3, %p45_p0  ;;  %s4031_s10 = smov [#allocation6]  }
   0xc   : > { %s4861_s30 = scalar_select %p4110_p4, 1, 0 }
   0xd   : > { %s4862_s8 = scalar_select %p4115_p6, 1, 0 }
   0xe   : > { %p4120_p8 = pnand %p3125_p5, %p208_p7  ;;  %s220_s11 = sshll.u32 %s4031_s10, 4  ;;  %s4124_s11 = int_to_ptr.vmem [resolvable:$true] %s220_s11 }
   0xf   : > { %4863 = sst [smem:[#allocation16_spill]] %s4862_s8  ;;  %s4032_s13 = smov [#allocation8]  }
  0x10   : > { %s4864_s9 = scalar_select %p4120_p8, 1, 0 }
  0x11   : > { %p3672_p9 = pneg %p4120_p8  ;;  %s236_s14 = sshll.u32 %s4032_s13, 4  ;;  %s4135_s14 = int_to_ptr.vmem [resolvable:$true] %s236_s14 }
  0x12   : > { %s4033_s15 = smov [#allocation9]   ;;  %s3841_s19 = scalar_lea.hbm %s4850_s1, 3072 }
  0x13   : > { %p4131_p11 = pnand %p3672_p9, %p4857_p1  ;;  %s4137_s16 = sshll.u32 %s4033_s15, 4  ;;  %s253_s16 = int_to_ptr.vmem [resolvable:$true] %s4137_s16 }
  0x14   : > { %p3842_p12 = scmp.ne.s32.totalorder %s4850_s1, %s3841_s19  ;;  %p3848_p5 = scmp.lt.u32.totalorder %s3841_s19, %s4850_s1 }
  0x15   : > { %p4147_p13 = pneg %p4131_p11 }
  0x17   : > { %p3844_p0 = pnand %p4147_p13, %p3842_p12 }
  0x19   : > { %p3845_p3 = pneg %p3844_p0 }
  0x1b   : > { %p3850_p7 = pnand %p3848_p5, %p3845_p3 }
  0x1d   : > { %3853 = shalt.err (!%p3850_p7)
}
  0x1e   : > { %s3854_s10 = scalar_lea.vmem %s4124_s11, 3072  ;;  %p3862_p2 = scmp.lt.s32.totalorder %s4124_s11, %s4124_s11 }
  0x1f   : > { %p3855_p9 = scmp.ne.s32.totalorder %s4124_s11, %s3854_s10  ;;  %p3863_p6 = scmp.lt.s32.totalorder %s3854_s10, %s3854_s10 }
  0x21   : > { %p3857_p10 = pnand %p3855_p9, %p4147_p13  ;;  %p3864_p12 = por %p3863_p6, %p3862_p2 }
  0x23   : > { %p3858_p1 = pneg %p3857_p10 }
  0x25   : > { %p3865_p0 = pnand %p3864_p12, %p3858_p1 }
  0x27   : > { %3868 = shalt.err (!%p3865_p0)
}
  0x28   : > { %s4034_s13 = smov 64   ;;  %s4035_s15 = smov 4  }
  0x29   : > { %3675 = dma.hbm_to_vmem [thread:$0]  (!%p4131_p11), %s4850_s1, 3072, %s4124_s11, [#allocation7], %s4034_s13, %s4034_s13, %s4035_s15  }
  0x2a   : > { %s3869_s21 = scalar_lea.hbm %s4852_s3, 3072 }
  0x2b   : > { %p3870_p1 = scmp.ne.s32.totalorder %s4852_s3, %s3869_s21  ;;  %p3876_p10 = scmp.lt.u32.totalorder %s3869_s21, %s4852_s3 }
  0x2d   : > { %p3872_p2 = pnand %p3870_p1, %p4147_p13 }
  0x2f   : > { %p3873_p6 = pneg %p3872_p2 }
  0x31   : > { %p3878_p3 = pnand %p3876_p10, %p3873_p6 }
  0x33   : > { %3881 = shalt.err (!%p3878_p3)
}
  0x34   : > { %s3882_s11 = scalar_lea.vmem %s4135_s14, 3072  ;;  %p3890_p12 = scmp.lt.s32.totalorder %s4135_s14, %s4135_s14 }
  0x35   : > { %p3883_p5 = scmp.ne.s32.totalorder %s4135_s14, %s3882_s11  ;;  %p3891_p0 = scmp.lt.s32.totalorder %s3882_s11, %s3882_s11 }
  0x37   : > { %p3885_p7 = pnand %p3883_p5, %p4147_p13  ;;  %p3892_p1 = por %p3891_p0, %p3890_p12 }
  0x39   : > { %p3886_p9 = pneg %p3885_p7 }
  0x3b   : > { %p3893_p2 = pnand %p3892_p1, %p3886_p9 }
  0x3d   : > { %3896 = shalt.err (!%p3893_p2)
}
  0x3e   : > { %3678 = dma.hbm_to_vmem [thread:$0]  (!%p4131_p11), %s4852_s3, 3072, %s4135_s14, [#allocation7], %s4034_s13, %s4034_s13, %s4035_s15  }
  0x3f   : > { %s3897_s20 = scalar_lea.hbm %s4854_s5, 1024 }
  0x40   : > { %p3898_p6 = scmp.ne.s32.totalorder %s4854_s5, %s3897_s20  ;;  %p3904_p5 = scmp.lt.u32.totalorder %s3897_s20, %s4854_s5 }
  0x42   : > { %p3900_p10 = pnand %p3898_p6, %p4147_p13 }
  0x44   : > { %p3901_p3 = pneg %p3900_p10 }
  0x46   : > { %p3906_p7 = pnand %p3904_p5, %p3901_p3 }
  0x48   : > { %3909 = shalt.err (!%p3906_p7)
}
  0x49   : > { %s3910_s11 = scalar_lea.vmem %s253_s16, 1024  ;;  %p3918_p1 = scmp.lt.s32.totalorder %s253_s16, %s253_s16 }
  0x4a   : > { %p3911_p9 = scmp.ne.s32.totalorder %s253_s16, %s3910_s11  ;;  %p3919_p2 = scmp.lt.s32.totalorder %s3910_s11, %s3910_s11 }
  0x4c   : > { %p3913_p12 = pnand %p3911_p9, %p4147_p13  ;;  %p3920_p4 = por %p3919_p2, %p3918_p1 }
  0x4e   : > { %p3914_p0 = pneg %p3913_p12 }
  0x50   : > { %p3921_p8 = pnand %p3920_p4, %p3914_p0 }
  0x52   : > { %3924 = shalt.err (!%p3921_p8)
}
  0x53   : > { %3681 = dma.hbm_to_vmem [thread:$0]  (!%p4131_p11), %s4854_s5, 1024, %s253_s16, [#allocation10], %s4034_s13, %s4034_s13, %s4035_s15  }
  0x54   : > { %s4220_s22 = sadd.s32 1, %s4029_s27   ;;  %s32_s17 = sadd.s32 1, %s4025_s26 }
  0x55   : > { %s29_s12 = ssub.s32 %s4029_s27, %s4220_s22  ;;  %p39_p8 = scmp.ne.s32.totalorder %s4025_s26, %s4021_s25 }
  0x56   : > { %p30_p4 = scmp.eq.s32.totalorder %s29_s12, 0  ;;  %p40_p13 = scmp.eq.s32.totalorder %s4029_s27, 0 }
  0x57   : > { %p3693_p6 = scmp.lt.s32.totalorder %s4029_s27, 2  ;;  %p4867_p3 = scmp.eq.s32.totalorder %s4101_s28, 1 }
  0x58   : > { %s4230_s18 = scalar_select %p30_p4, %s4025_s26, %s32_s17  }
  0x59   : > { %p41_p10 = por %p40_p13, %p39_p8  ;;  %p4234_p5 = por %p4867_p3, %p39_p8 }
  0x5a   : > { %s269_s20 = sand.u32 1, %s4025_s26   ;;  %s3294_s21 = sshll.u32 %s4029_s27, 10 }
  0x5b   : > { %s3130_s16 = sshll.u32 %s269_s20, 6  ;;  %s4243_s10 = scalar_lea.hbm %s4849_s0, %s3294_s21 }
  0x5c   : > { %s273_s11 = scalar_lea.vmem [#allocation3], %s3130_s16  ;;  %p4245_p11 = pnand %p3693_p6, %p41_p10 }
  0x5d   : > { %s281_s14 = sshll.u32 %s273_s11, 4  ;;  %s4251_s12 = scalar_lea.sflag [#allocation4], %s269_s20  ;;  %s4249_s14 = int_to_ptr.vmem [resolvable:$true] %s281_s14 }
  0x5e   : > { %s3925_s17 = scalar_lea.hbm %s4243_s10, 1024  ;;  %p3927_p9 = pneg %p4245_p11 }
  0x5f   : > { %p3926_p7 = scmp.ne.s32.totalorder %s4243_s10, %s3925_s17  ;;  %s3930_s23 = scalar_lea.hbm %s4849_s0, 2048 }
  0x60   : > { %p3931_p1 = scmp.lt.u32.totalorder %s4243_s10, %s4849_s0  ;;  %p3932_p2 = scmp.lt.u32.totalorder %s3930_s23, %s3925_s17 }
  0x61   : > { %p3928_p12 = pnand %p3927_p9, %p3926_p7  ;;  %p3934_p8 = scmp.lt.u32.totalorder %s3925_s17, %s4243_s10 }
  0x62   : > { %p3933_p4 = por %p3932_p2, %p3931_p1 }
  0x63   : > { %p3929_p0 = pneg %p3928_p12 }
  0x64   : > { %p3935_p13 = por %p3934_p8, %p3933_p4 }
  0x66   : > { %p3936_p6 = pnand %p3935_p13, %p3929_p0 }
  0x68   : > { %3939 = shalt.err (!%p3936_p6)
}
  0x69   : > { %s3940_s20 = scalar_lea.vmem %s4249_s14, 1024  ;;  %s4036_s21 = smov [#allocation3]  }
  0x6a   : > { %p3941_p10 = scmp.ne.s32.totalorder %s4249_s14, %s3940_s20  ;;  %s3945_s16 = sshll.u32 %s4036_s21, 4  ;;  %s3946_s16 = int_to_ptr.vmem [resolvable:$false] %s3945_s16 }
  0x6b   : > { %s3947_s29 = scalar_lea.vmem %s3946_s16, 2048  ;;  %p3948_p12 = scmp.lt.s32.totalorder %s4249_s14, %s3946_s16 }
  0x6c   : > { %p3943_p3 = pnand %p3941_p10, %p3927_p9  ;;  %p3949_p1 = scmp.lt.s32.totalorder %s3947_s29, %s3940_s20 }
  0x6e   : > { %p3944_p7 = pneg %p3943_p3  ;;  %p3950_p2 = por %p3949_p1, %p3948_p12 }
  0x70   : > { %p3951_p4 = pnand %p3950_p2, %p3944_p7 }
  0x72   : > { %3954 = shalt.err (!%p3951_p4)
}
  0x73   : > { %3685 = dma.hbm_to_vmem [thread:$0]  (!%p4245_p11), %s4243_s10, 1024, %s4249_s14, %s4251_s12, %s4034_s13, %s4034_s13, %s4035_s15  }
  0x74   : > { %p4870_p9 = scmp.ne.s32.totalorder %s4864_s9, 0 }
  0x75   : > { %s4285_s17 = sand.u32 (!%p4870_p9), 1, %s4021_s25   ;;  %p4871_p0 = scmp.ne.s32.totalorder (!%p4870_p9), %s4861_s30, 0 }
  0x76   : > { %293 = sbr.rel (%p4870_p9) target bundleno = 981 (0x3d5), region = 48  ;;  %s3135_s23 = sshll.u32 (!%p4870_p9), %s4285_s17, 6 }
  0x77   : > { %s296_s11 = scalar_lea.sflag (!%p4870_p9), [#allocation4], %s4285_s17  ;;  %s4289_s20 = scalar_lea.vmem (!%p4870_p9), [#allocation3], %s3135_s23 }
  0x7d   : > { %4000 = dma.done.wait (%p4871_p0), %s296_s11, 1024  }
  0x7e   : > { %4002 = vsyncadd (%p4871_p0), %s296_s11, 4294966272  ;;  %p4872_p11 = scmp.eq.s32.totalorder %s4101_s28, 0 }
  0x80   : > { %4004 = dma.done.wait (%p4872_p11), [#allocation7], 6144   ;;  %p4873_p8 = pmov %p4872_p11 }
  0x82   : > { %4006 = vsyncadd (%p4873_p8), [#allocation7], 4294961152  ;;  %p4874_p13 = pmov %p4873_p8 }
  0x83   : > { %p4875_p6 = pmov %p4873_p8 }
  0x84   : > { %4008 = dma.done.wait (%p4874_p13), [#allocation10], 1024  }
  0x85   : > { %4010 = vsyncadd (%p4875_p6), [#allocation10], 4294966272  ;;  %v3737_v0 = vld [vmem:[#allocation6 + $0x40] sm:$0xff]   ;;  %v3740_v3 = vld [vmem:[#allocation6 + $0x48] sm:$0xff]   ;;  %vm346_vm0 = vsmask.f32 256 }
  0x86   : > { %v3738_v1 = vld [vmem:[#allocation6] sm:$0xff]   ;;  %3368 = vmatprep.subr.bf16.mxu0 %v3737_v0  ;;  %v3741_v4 = vld [vmem:[#allocation6 + $0x8] sm:$0xff]   ;;  %v3743_v6 = vld [vmem:[#allocation6 + $0x50] sm:$0xff]   ;;  %vm345_vm1 = vcmask 1040384   ;;  %vm372_vm2 = vsmask.f32 7938 }
  0x87   : > { %v3739_v2 = vld [vmem:[#allocation6 + $0x80] sm:$0xff]   ;;  %3369 = vmatpush3.bf16.msra.mxu0 %v3738_v1  ;;  %v3742_v5 = vld [vmem:[#allocation6 + $0x88] sm:$0xff]   ;;  %v3744_v7 = vld [vmem:[#allocation6 + $0x10] sm:$0xff]   ;;  %vm414_vm5 = vsmask.f32 4368  ;;  %vm576_vm6 = vcmask 1043456  }
  0x88   : > { %3544 = vmatprep.subr.bf16.mxu1 %v3739_v2  ;;  %3370 = vmatprep.subr.bf16.mxu0 %v3740_v3  ;;  %v3745_v8 = vld [vmem:[#allocation6 + $0x90] sm:$0xff]   ;;  %v3746_v9 = vld [vmem:[#allocation6 + $0x58] sm:$0xff]   ;;  %v3749_v12 = vld [vmem:[#allocation6 + $0x60] sm:$0xff]   ;;  %vm738_vm9 = vsmask.f32 7424  ;;  %vm867_vm10 = vcmask 1046528  }
  0x89   : > { %3545 = vmatpush3.bf16.msra.mxu1 %v3739_v2  ;;  %v3747_v10 = vld [vmem:[#allocation6 + $0x18] sm:$0xff]   ;;  %v3751_v13 = vld [vmem:[#allocation6 + $0xa0] sm:$0xff]   ;;  %vm4304_vm3 = vmand %vm345_vm1, %vm346_vm0  ;;  %vm2532_vm11 = vsmask.f32 3328  ;;  %vm2533_vm12 = vsmask.f32 7440 }
  0x8a   : > { %3546 = vmatprep.subr.bf16.mxu1 %v3742_v5  ;;  %v3748_v11 = vld [vmem:[#allocation6 + $0x98] sm:$0xff]   ;;  %v3750_v15 = vld [vmem:[#allocation6 + $0x20] sm:$0xff]   ;;  %v3752_v16 = vld [vmem:[#allocation6 + $0x68] sm:$0xff]   ;;  %s3139_s8 = sshll.u32 %s4285_s17, 7  ;;  %s3328_s21 = sshll.u32 %s4101_s28, 11 }
  0x8b   : > { %3371 = vmatpush3.bf16.msra.mxu0 %v3741_v4  ;;  %vm4309_vm4 = vmand %vm345_vm1, %vm372_vm2  ;;  %v3754_v18 = vld [vmem:[#allocation6 + $0xa8] sm:$0xff]   ;;  %v3755_v20 = vld [vmem:[#allocation6 + $0x70] sm:$0xff]   ;;  %s4762_s12 = scalar_lea.vmem [#allocation11], %s3139_s8  ;;  %s4800_s11 = scalar_lea.hbm %s4856_s7, %s3328_s21 }
  0x8c   : > { %3372 = vmatprep.subr.bf16.mxu0 %v3743_v6  ;;  %v3753_v19 = vld [vmem:[#allocation6 + $0x28] sm:$0xff]   ;;  %v3756_v21 = vld [vmem:[#allocation6 + $0x30] sm:$0xff]   ;;  %v3758_v23 = vld [vmem:[#allocation6 + $0x78] sm:$0xff]   ;;  %s3022_s16 = sshll.u32 %s4762_s12, 4  ;;  %s3008_s28 = scalar_lea.sflag [#allocation5], %s4285_s17  ;;  %s4802_s16 = int_to_ptr.vmem [resolvable:$true] %s3022_s16 }
  0x8d   : > { %3547 = vmatpush3.bf16.msra.mxu1 %v3742_v5  ;;  %v3757_v22 = vld [vmem:[#allocation6 + $0xb0] sm:$0xff]   ;;  %v3760_v24 = vld [vmem:[#allocation6 + $0xb8] sm:$0xff]   ;;  %v348_v25 = vld [vmem:[#allocation2] sm:$0x1]  ;;  %s4037_s30 = smov [#allocation11]  }
  0x8e   : > { %3548 = vmatprep.subr.bf16.mxu1 %v3745_v8  ;;  %v374_v26 = vld [vmem:[#allocation2 + $0x8] sm:$0x1]  ;;  %v398_v27 = vld [vmem:[%s4289_s20] sm:$0xf]  ;;  %v349_v28 = vsel %vm4304_vm3, 0, %v348_v25  ;;  %v3759_v37 = vld [vmem:[#allocation6 + $0x38] sm:$0xff]  }
  0x8f   : > { %3373 = vmatpush3.bf16.msra.mxu0 %v3744_v7  ;;  %v375_v29 = vsel %vm4309_vm4, 0, %v374_v26  ;;  %v399_v30 = vld [vmem:[%s4289_s20 + $0x4] sm:$0xf]  ;;  %v417_v31 = vshrl.u32 %v398_v27, 16  ;;  %v420_v32 = vshll.u32 %v398_v27, 16  ;;  %vm4327_vm7 = vmor %vm346_vm0, %vm414_vm5  ;;  %s3959_s9 = sshll.u32 %s4037_s30, 4  ;;  %s3960_s9 = int_to_ptr.vmem [resolvable:$false] %s3959_s9 }
  0x90   : > { %3374 = vmatprep.subr.bf16.mxu0 %v3746_v9  ;;  %350 = vst [vmem:[#allocation2] sm:$0x1] %v349_v28  ;;  %376 = vst [vmem:[#allocation2 + $0x8] sm:$0x1] %v375_v29  ;;  %v425_v33 = vshrl.u32 %v399_v30, 16  ;;  %v428_v34 = vshll.u32 %v399_v30, 16  ;;  %p3962_p12 = scmp.lt.s32.totalorder %s4802_s16, %s3960_s9 }
  0x91   : > { %3549 = vmatpush3.bf16.msra.mxu1 %v3745_v8  ;;  %v351_v35 = vld [vmem:[#allocation2 + $0xc] sm:$0x1]  ;;  %v377_v36 = vld [vmem:[#allocation2 + $0x14] sm:$0x1]  ;;  %v419_v38 = vrot.slane %v417_v31, 7  ;;  %vm4335_vm8 = vmand %vm576_vm6, %vm372_vm2  ;;  %s3961_s13 = scalar_lea.vmem %s3960_s9, 4096 }
  0x92   : > { %3550 = vmatprep.subr.bf16.mxu1 %v3748_v11  ;;  %v352_v39 = vsel %vm4304_vm3, 0, %v351_v35  ;;  %v378_v40 = vsel %vm4309_vm4, 0, %v377_v36  ;;  %v400_v41 = vld [vmem:[%s4289_s20 + $0x8] sm:$0xf]  ;;  %v427_v42 = vrot.slane %v425_v33, 7  ;;  %vm4647_vm13 = vmor %vm2532_vm11, %vm2533_vm12 }
  0x93   : > { %3375 = vmatpush3.bf16.msra.mxu0 %v3747_v10  ;;  %353 = vst [vmem:[#allocation2 + $0xc] sm:$0x1] %v352_v39  ;;  %379 = vst [vmem:[#allocation2 + $0x14] sm:$0x1] %v378_v40  ;;  %v401_v43 = vld [vmem:[%s4289_s20 + $0xc] sm:$0xf]  ;;  %v422_v47 = vor.u32 %v420_v32, %v419_v38 }
  0x94   : > { %3376 = vmatprep.subr.bf16.mxu0 %v3749_v12  ;;  %v434_v44 = vshrl.u32 %v400_v41, 16  ;;  %v437_v45 = vshll.u32 %v400_v41, 16  ;;  %v423_v48 = vrot.slane %v419_v38, 4  ;;  %v442_v49 = vshrl.u32 %v401_v43, 16  ;;  %v354_v51 = vld [vmem:[#allocation2 + $0x18] sm:$0x1] }
  0x95   : > { %3551 = vmatpush3.bf16.msra.mxu1 %v3748_v11  ;;  %v445_v50 = vshll.u32 %v401_v43, 16  ;;  %v430_v52 = vor.u32 %v428_v34, %v427_v42  ;;  %v432_v53 = vrot.slane %v427_v42, 4  ;;  %v355_v55 = vsel %vm4304_vm3, 0, %v354_v51  ;;  %v380_v56 = vld [vmem:[#allocation2 + $0x20] sm:$0x1] }
  0x96   : > { %3552 = vmatprep.subr.bf16.mxu1 %v3751_v13  ;;  %v436_v54 = vrot.slane %v434_v44, 7  ;;  %v444_v58 = vrot.slane %v442_v49, 7  ;;  %356 = vst [vmem:[#allocation2 + $0x18] sm:$0x1] %v355_v55  ;;  %v381_v59 = vsel %vm4309_vm4, 0, %v380_v56 }
  0x97   : > { %3377 = vmatpush3.bf16.msra.mxu0 %v3750_v15  ;;  %v402_v60 = vld [vmem:[%s4289_s20 + $0x10] sm:$0xf]  ;;  %v403_v61 = vld [vmem:[%s4289_s20 + $0x14] sm:$0xf]  ;;  %v431_v62 = vsel %vm4327_vm7, %v423_v48, %v430_v52  ;;  %382 = vst [vmem:[#allocation2 + $0x20] sm:$0x1] %v381_v59 }
  0x98   : > { %3378 = vmatprep.subr.bf16.mxu0 %v3752_v16  ;;  %v439_v63 = vor.u32 %v437_v45, %v436_v54  ;;  %v440_v0 = vrot.slane %v436_v54, 4  ;;  %v451_v1 = vshrl.u32 %v402_v60, 16  ;;  %v357_v2 = vld [vmem:[#allocation2 + $0x24] sm:$0x1]  ;;  %v383_v3 = vld [vmem:[#allocation2 + $0x2c] sm:$0x1]  ;;  %v447_v6 = vor.u32 %v445_v50, %v444_v58 }
  0x99   : > { %3553 = vmatpush3.bf16.msra.mxu1 %v3751_v13  ;;  %v578_v4 = vld [vmem:[#allocation2] sm:$0xf]  ;;  %581 = vst [vmem:[#allocation2 + $0x4] sm:$0xf] %v431_v62  ;;  %v582_v5 = vld [vmem:[#allocation2 + $0x8] sm:$0x1] }
  0x9a   : > { %3554 = vmatprep.subr.bf16.mxu1 %v3754_v18  ;;  %v449_v7 = vrot.slane %v444_v58, 4  ;;  %v454_v8 = vshll.u32 %v402_v60, 16  ;;  %v579_v9 = vsel %vm4335_vm8, %v422_v47, %v578_v4  ;;  %v583_v10 = vsel %vm4304_vm3, %v432_v53, %v582_v5  ;;  %v404_v13 = vld [vmem:[%s4289_s20 + $0x18] sm:$0xf]  ;;  %v405_v15 = vld [vmem:[%s4289_s20 + $0x1c] sm:$0xf] }
  0x9b   : > { %3379 = vmatpush3.bf16.msra.mxu0 %v3753_v19  ;;  %v453_v11 = vrot.slane %v451_v1, 7  ;;  %v459_v12 = vshrl.u32 %v403_v61, 16  ;;  %580 = vst [vmem:[#allocation2] sm:$0xf] %v579_v9  ;;  %584 = vst [vmem:[#allocation2 + $0x8] sm:$0x1] %v583_v10  ;;  %v448_v16 = vsel %vm4327_vm7, %v440_v0, %v447_v6 }
  0x9c   : > { %3380 = vmatprep.subr.bf16.mxu0 %v3755_v20  ;;  %v589_v19 = vld [vmem:[#allocation2 + $0x14] sm:$0x1]  ;;  %v462_v20 = vshll.u32 %v403_v61, 16  ;;  %588 = vst [vmem:[#allocation2 + $0x10] sm:$0xf] %v448_v16  ;;  %v384_v29 = vsel %vm4309_vm4, 0, %v383_v3 }
  0x9d   : > { %3555 = vmatpush3.bf16.msra.mxu1 %v3754_v18  ;;  %v585_v18 = vld [vmem:[#allocation2 + $0xc] sm:$0xf]  ;;  %v457_v25 = vrot.slane %v453_v11, 4  ;;  %v360_v26 = vld [vmem:[#allocation2 + $0x30] sm:$0x1]  ;;  %v461_v28 = vrot.slane %v459_v12, 7 }
  0x9e   : > { %3556 = vmatprep.subr.bf16.mxu1 %v3757_v22  ;;  %v386_v27 = vld [vmem:[#allocation2 + $0x38] sm:$0x1]  ;;  %v468_v30 = vshrl.u32 %v404_v13, 16  ;;  %v471_v31 = vshll.u32 %v404_v13, 16  ;;  %v4362_v32 = vld [vmem:[%s4289_s20 + $0x20] sm:$0xf] }
  0x9f   : > { %3381 = vmatpush3.bf16.msra.mxu0 %v3756_v21  ;;  %v358_v21 = vsel %vm4304_vm3, 0, %v357_v2  ;;  %v592_v33 = vld [vmem:[#allocation2 + $0x18] sm:$0xf]  ;;  %385 = vst [vmem:[#allocation2 + $0x2c] sm:$0x1] %v384_v29  ;;  %v476_v34 = vshrl.u32 %v405_v15, 16  ;;  %v464_v38 = vor.u32 %v462_v20, %v461_v28 }
  0xa0   : > { %3382 = vmatprep.subr.bf16.mxu0 %v3758_v23  ;;  %v590_v23 = vsel %vm4304_vm3, %v449_v7, %v589_v19  ;;  %359 = vst [vmem:[#allocation2 + $0x24] sm:$0x1] %v358_v21  ;;  %v479_v35 = vshll.u32 %v405_v15, 16  ;;  %v361_v36 = vsel %vm4304_vm3, 0, %v360_v26  ;;  %v466_v39 = vrot.slane %v461_v28, 4 }
  0xa1   : > { %3557 = vmatpush3.bf16.msra.mxu1 %v3757_v22  ;;  %v586_v22 = vsel %vm4335_vm8, %v439_v63, %v585_v18  ;;  %591 = vst [vmem:[#allocation2 + $0x14] sm:$0x1] %v590_v23  ;;  %v596_v41 = vld [vmem:[#allocation2 + $0x20] sm:$0x1]  ;;  %v470_v42 = vrot.slane %v468_v30, 7  ;;  %v478_v45 = vrot.slane %v476_v34, 7  ;;  %v465_v49 = vsel %vm4327_vm7, %v457_v25, %v464_v38 }
  0xa2   : > { %3558 = vmatprep.subr.bf16.mxu1 %v3760_v24  ;;  %587 = vst [vmem:[#allocation2 + $0xc] sm:$0xf] %v586_v22  ;;  %362 = vst [vmem:[#allocation2 + $0x30] sm:$0x1] %v361_v36  ;;  %v4371_v43 = vld [vmem:[%s4289_s20 + $0x24] sm:$0xf]  ;;  %v597_v50 = vsel %vm4304_vm3, %v466_v39, %v596_v41 }
  0xa3   : > { %3383 = vmatpush3.bf16.msra.mxu0 %v3759_v37  ;;  %v387_v37 = vsel %vm4309_vm4, 0, %v386_v27  ;;  %v635_v44 = vld [vmem:[#allocation2 + $0x4] sm:$0xf]  ;;  %v485_v47 = vshrl.u32 %v4362_v32, 16  ;;  %v488_v48 = vshll.u32 %v4362_v32, 16  ;;  %v474_v51 = vrot.slane %v470_v42, 4 }
  0xa4   : > { %388 = vst [vmem:[#allocation2 + $0x38] sm:$0x1] %v387_v37  ;;  %v493_v52 = vshrl.u32 %v4371_v43, 16  ;;  %v4380_v53 = vld [vmem:[#allocation2] sm:$0xf]  ;;  %v473_v55 = vor.u32 %v471_v31, %v470_v42  ;;  %v481_v56 = vor.u32 %v479_v35, %v478_v45  ;;  %v483_v62 = vrot.slane %v478_v45, 4 }
  0xa5   : > { %3559 = vmatpush3.bf16.msra.mxu1 %v3760_v24  ;;  %v456_v24 = vor.u32 %v454_v8, %v453_v11  ;;  %v658_v54 = vld [vmem:[#allocation2] sm:$0xe]  ;;  %595 = vst [vmem:[#allocation2 + $0x1c] sm:$0xf] %v465_v49  ;;  %598 = vst [vmem:[#allocation2 + $0x20] sm:$0x1] %v597_v50  ;;  %v3140_v58 = vcombine.low %v4380_v53, %v635_v44 }
  0xa6   : > { %v3762_v59 = vld [vmem:[#allocation2 + $0x8] ss:$0 sps:$4 sm:$0x11]   ;;  %v3156_v60 = vcombine.low %v658_v54, %v635_v44  ;;  %v637_v61 = vld [vmem:[#allocation2 + $0x10] sm:$0xf]  ;;  %v482_v1 = vsel %vm4327_vm7, %v474_v51, %v481_v56  ;;  %v495_v37 = vrot.slane %v493_v52, 7 }
  0xa7   : > { %v593_v40 = vsel %vm4335_vm8, %v456_v24, %v592_v33  ;;  %v740_v2 = vshrl.u32 %v3140_v58, 16  ;;  %v742_v3 = vshll.u32 %v3140_v58, 16  ;;  %v747_v4 = vshll.u32 %v3762_v59, 16  ;;  %v599_v6 = vld [vmem:[#allocation2 + $0x24] sm:$0xf] }
  0xa8   : > { %594 = vst [vmem:[#allocation2 + $0x18] sm:$0xf] %v593_v40  ;;  %v868_v5 = vrot.slane %v3156_v60, 1  ;;  %602 = vst [vmem:[#allocation2 + $0x28] sm:$0xf] %v482_v1  ;;  %v869_v7 = vrot.slane %v3762_v59, 1  ;;  %v600_v11 = vsel %vm4335_vm8, %v473_v55, %v599_v6 }
  0xa9   : > { %v659_v63 = vld [vmem:[#allocation2 + $0xc] sm:$0xe]  ;;  %v3764_v8 = vld [vmem:[#allocation2 + $0x14] ss:$0 sps:$4 sm:$0x11]   ;;  %v744_v13 = vrot.slane %v742_v3, 1 }
  0xaa   : > { %v636_v0 = vld [vmem:[#allocation2 + $0xc] sm:$0xf]  ;;  %v3157_v9 = vcombine.low %v659_v63, %v637_v61  ;;  %v749_v15 = vrot.slane %v747_v4, 1  ;;  %601 = vst [vmem:[#allocation2 + $0x24] sm:$0xf] %v600_v11  ;;  %v870_v20 = vsel %vm867_vm10, %v868_v5, %v869_v7  ;;  %v872_v22 = vrot.slane %v3764_v8, 1 }
  0xab   : > { %v4385_v10 = vcombine.low %v636_v0, %v637_v61  ;;  %v603_v12 = vld [vmem:[#allocation2 + $0x2c] sm:$0x1]  ;;  %v745_v24 = vor.u32 %v744_v13, %v740_v2  ;;  %3560 = vmatprep.mubr.bf16.mxu1 %v870_v20  ;;  %v759_v26 = vshll.u32 %v3764_v8, 16  ;;  %v487_v33 = vrot.slane %v485_v47, 7  ;;  %v606_v50 = vld [vmem:[#allocation2 + $0x30] sm:$0xf] }
  0xac   : > { %v604_v19 = vsel %vm4304_vm3, %v483_v62, %v603_v12  ;;  %v871_v21 = vrot.slane %v3157_v9, 1  ;;  %v639_v27 = vld [vmem:[#allocation2 + $0x1c] sm:$0xf]  ;;  %v3768_v30 = vld [vmem:[#allocation2 + $0x20] ss:$0 sps:$4 sm:$0x11]  }
  0xad   : > { %v752_v23 = vshrl.u32 %v4385_v10, 16  ;;  %605 = vst [vmem:[#allocation2 + $0x2c] sm:$0x1] %v604_v19  ;;  %v754_v25 = vshll.u32 %v4385_v10, 16  ;;  %v750_v34 = vsel %vm738_vm9, %v745_v24, %v749_v15  ;;  %v761_v36 = vrot.slane %v759_v26, 1 }
  0xae   : > { %v873_v28 = vsel %vm867_vm10, %v871_v21, %v872_v22  ;;  %1131 = vmatprep.mubr.bf16.mxu0 %v750_v34  ;;  %v771_v40 = vshll.u32 %v3768_v30, 16  ;;  %v875_v45 = vrot.slane %v3768_v30, 1  ;;  %v490_v47 = vor.u32 %v488_v48, %v487_v33  ;;  %v610_v51 = vld [vmem:[#allocation2 + $0x38] sm:$0x1]  ;;  %v363_v59 = vld [vmem:[#allocation2 + $0x3c] sm:$0x1] }
  0xaf   : > { %v638_v16 = vld [vmem:[#allocation2 + $0x18] sm:$0xf]  ;;  %3561 = vmatmul.mubr.bf16.vlgmr.msra.gmra.mrb[0].mxu1 %v873_v28  ;;  %v756_v35 = vrot.slane %v754_v25, 1  ;;  %v641_v42 = vld [vmem:[#allocation2 + $0x28] sm:$0xf]  ;;  %1132 = vmatmul.mubr.bf16.vlgmr.msra.gmra.mrb[0].mxu0 %v3140_v58  ;;  %v491_v49 = vrot.slane %v487_v33, 4 }
  0xb0   : > { %v660_v18 = vld [vmem:[#allocation2 + $0x18] sm:$0xe]  ;;  %v4395_v29 = vcombine.low %v638_v16, %v639_v27  ;;  %v773_v55 = vrot.slane %v771_v40, 1  ;;  %v389_v60 = vld [vmem:[#allocation2 + $0x44] sm:$0x1]  ;;  %v496_v48 = vshll.u32 %v4371_v43, 16  ;;  %v607_v2 = vsel %vm4335_vm8, %v490_v47, %v606_v50 }
  0xb1   : > { %v3158_v31 = vcombine.low %v660_v18, %v639_v27  ;;  %v757_v44 = vor.u32 %v756_v35, %v752_v23  ;;  %v661_v52 = vld [vmem:[#allocation2 + $0x24] sm:$0xe]  ;;  %v500_v1 = vrot.slane %v495_v37, 4  ;;  %v408_v3 = vld [vmem:[%s4289_s20 + $0x28] sm:$0xf]  ;;  %v364_v20 = vsel %vm4304_vm3, 0, %v363_v59 }
  0xb2   : > { %v764_v38 = vshrl.u32 %v4395_v29, 16  ;;  %v766_v39 = vshll.u32 %v4395_v29, 16  ;;  %v640_v56 = vld [vmem:[#allocation2 + $0x24] sm:$0xf]  ;;  %v3159_v63 = vcombine.low %v661_v52, %v641_v42  ;;  %v409_v4 = vld [vmem:[%s4289_s20 + $0x2c] sm:$0xf]  ;;  %v498_v43 = vor.u32 %v496_v48, %v495_v37 }
  0xb3   : > { %v874_v41 = vrot.slane %v3158_v31, 1  ;;  %v762_v61 = vsel %vm738_vm9, %v757_v44, %v761_v36  ;;  %v4404_v0 = vcombine.low %v640_v56, %v641_v42  ;;  %608 = vst [vmem:[#allocation2 + $0x30] sm:$0xf] %v607_v2  ;;  %v366_v9 = vld [vmem:[#allocation2 + $0x48] sm:$0x1]  ;;  %v611_v13 = vsel %vm4304_vm3, %v500_v1, %v610_v51 }
  0xb4   : > { %v768_v54 = vrot.slane %v766_v39, 1  ;;  %v3770_v62 = vld [vmem:[#allocation2 + $0x2c] ss:$0 sps:$4 sm:$0x11]   ;;  %1139 = vmatprep.mubr.bf16.mxu0 %v762_v61  ;;  %v877_v5 = vrot.slane %v3159_v63, 1  ;;  %v390_v21 = vsel %vm4309_vm4, 0, %v389_v60  ;;  %v499_v24 = vsel %vm4327_vm7, %v491_v49, %v498_v43 }
  0xb5   : > { %v876_v58 = vsel %vm867_vm10, %v874_v41, %v875_v45  ;;  %v878_v6 = vrot.slane %v3770_v62, 1  ;;  %v776_v7 = vshrl.u32 %v4404_v0, 16  ;;  %v778_v8 = vshll.u32 %v4404_v0, 16  ;;  %v392_v15 = vld [vmem:[#allocation2 + $0x50] sm:$0x1] }
  0xb6   : > { %v769_v32 = vor.u32 %v768_v54, %v764_v38  ;;  %3564 = vmatprep.mubr.bf16.mxu1 %v876_v58  ;;  %v783_v12 = vshll.u32 %v3770_v62, 16  ;;  %v410_v16 = vld [vmem:[%s4289_s20 + $0x30] sm:$0xf]  ;;  %612 = vst [vmem:[#allocation2 + $0x38] sm:$0x1] %v611_v13  ;;  %v502_v25 = vshrl.u32 %v408_v3, 16 }
  0xb7   : > { %v879_v18 = vsel %vm867_vm10, %v877_v5, %v878_v6  ;;  %v780_v19 = vrot.slane %v778_v8, 1  ;;  %v411_v22 = vld [vmem:[%s4289_s20 + $0x34] sm:$0xf]  ;;  %365 = vst [vmem:[#allocation2 + $0x3c] sm:$0x1] %v364_v20  ;;  %v505_v26 = vshll.u32 %v408_v3, 16  ;;  %1140 = vmatmul.mubr.bf16.gmra.mrb[4].mxu0 %v4385_v10 }
  0xb8   : > { %v774_v11 = vsel %vm738_vm9, %v769_v32, %v773_v55  ;;  %3565 = vmatmul.mubr.bf16.gmra.mrb[4].mxu1 %v879_v18  ;;  %v785_v23 = vrot.slane %v783_v12, 1  ;;  %391 = vst [vmem:[#allocation2 + $0x44] sm:$0x1] %v390_v21  ;;  %v369_v27 = vld [vmem:[#allocation2 + $0x54] sm:$0x1]  ;;  %v510_v30 = vshrl.u32 %v409_v4, 16 }
  0xb9   : > { %v781_v28 = vor.u32 %v780_v19, %v776_v7  ;;  %609 = vst [vmem:[#allocation2 + $0x34] sm:$0xf] %v499_v24  ;;  %v513_v31 = vshll.u32 %v409_v4, 16  ;;  %v367_v33 = vsel %vm4304_vm3, 0, %v366_v9  ;;  %1147 = vmatprep.mubr.bf16.mxu0 %v774_v11  ;;  %v504_v34 = vrot.slane %v502_v25, 7 }
  0xba   : > { %368 = vst [vmem:[#allocation2 + $0x48] sm:$0x1] %v367_v33  ;;  %v393_v35 = vsel %vm4309_vm4, 0, %v392_v15  ;;  %v519_v36 = vshrl.u32 %v410_v16, 16  ;;  %v522_v37 = vshll.u32 %v410_v16, 16  ;;  %v512_v39 = vrot.slane %v510_v30, 7 }
  0xbb   : > { %v395_v38 = vld [vmem:[#allocation2 + $0x5c] sm:$0x1]  ;;  %394 = vst [vmem:[#allocation2 + $0x50] sm:$0x1] %v393_v35  ;;  %v527_v10 = vshrl.u32 %v411_v22, 16  ;;  %v530_v40 = vshll.u32 %v411_v22, 16  ;;  %v507_v44 = vor.u32 %v505_v26, %v504_v34  ;;  %v786_v56 = vsel %vm738_vm9, %v781_v28, %v785_v23 }
  0xbc   : > { %v642_v41 = vld [vmem:[#allocation2 + $0x30] sm:$0xf]  ;;  %v508_v45 = vrot.slane %v504_v34, 4  ;;  %v521_v47 = vrot.slane %v519_v36, 7  ;;  %v412_v49 = vld [vmem:[%s4289_s20 + $0x38] sm:$0xf]  ;;  %v515_v50 = vor.u32 %v513_v31, %v512_v39 }
  0xbd   : > { %v662_v42 = vld [vmem:[#allocation2 + $0x30] sm:$0xe]  ;;  %v517_v51 = vrot.slane %v512_v39, 4  ;;  %v529_v54 = vrot.slane %v527_v10, 7  ;;  %v370_v55 = vsel %vm4304_vm3, 0, %v369_v27  ;;  %v396_v1 = vsel %vm4309_vm4, 0, %v395_v38 }
  0xbe   : > { %v413_v52 = vld [vmem:[%s4289_s20 + $0x3c] sm:$0xf]  ;;  %v3774_v59 = vld [vmem:[#allocation2 + $0x38] ss:$0 sps:$4 sm:$0x11]   ;;  %v524_v60 = vor.u32 %v522_v37, %v521_v47  ;;  %v525_v61 = vrot.slane %v521_v47, 4  ;;  %v516_v58 = vsel %vm4327_vm7, %v508_v45, %v515_v50 }
  0xbf   : > { %371 = vst [vmem:[#allocation2 + $0x54] sm:$0x1] %v370_v55  ;;  %v613_v62 = vld [vmem:[#allocation2 + $0x3c] sm:$0xf]  ;;  %v617_v63 = vld [vmem:[#allocation2 + $0x44] sm:$0x1]  ;;  %v532_v32 = vor.u32 %v530_v40, %v529_v54  ;;  %1148 = vmatmul.mubr.bf16.gmra.mrb[8].mxu0 %v4395_v29 }
  0xc0   : > { %v534_v48 = vrot.slane %v529_v54, 4  ;;  %v643_v2 = vld [vmem:[#allocation2 + $0x34] sm:$0xf]  ;;  %v795_v3 = vshll.u32 %v3774_v59, 16  ;;  %v881_v4 = vrot.slane %v3774_v59, 1  ;;  %v614_v5 = vsel %vm4335_vm8, %v507_v44, %v613_v62  ;;  %1155 = vmatprep.mubr.bf16.mxu0 %v786_v56 }
  0xc1   : > { %616 = vst [vmem:[#allocation2 + $0x40] sm:$0xf] %v516_v58  ;;  %v618_v6 = vsel %vm4304_vm3, %v517_v51, %v617_v63  ;;  %397 = vst [vmem:[#allocation2 + $0x5c] sm:$0x1] %v396_v1  ;;  %v4444_v7 = vcombine.low %v642_v41, %v643_v2  ;;  %v3160_v8 = vcombine.low %v662_v42, %v643_v2  ;;  %v620_v9 = vld [vmem:[#allocation2 + $0x48] sm:$0xf] }
  0xc2   : > { %615 = vst [vmem:[#allocation2 + $0x3c] sm:$0xf] %v614_v5  ;;  %619 = vst [vmem:[#allocation2 + $0x44] sm:$0x1] %v618_v6  ;;  %v533_v17 = vsel %vm4327_vm7, %v525_v61, %v532_v32  ;;  %v536_v11 = vshrl.u32 %v412_v49, 16  ;;  %v621_v12 = vsel %vm4335_vm8, %v524_v60, %v620_v9  ;;  %v539_v13 = vshll.u32 %v412_v49, 16 }
  0xc3   : > { %623 = vst [vmem:[#allocation2 + $0x4c] sm:$0xf] %v533_v17  ;;  %v624_v43 = vld [vmem:[#allocation2 + $0x50] sm:$0x1]  ;;  %v544_v15 = vshrl.u32 %v413_v52, 16  ;;  %v788_v29 = vshrl.u32 %v4444_v7, 16 }
  0xc4   : > { %v790_v16 = vshll.u32 %v4444_v7, 16  ;;  %v880_v18 = vrot.slane %v3160_v8, 1  ;;  %622 = vst [vmem:[#allocation2 + $0x48] sm:$0xf] %v621_v12  ;;  %v625_v19 = vsel %vm4304_vm3, %v534_v48, %v624_v43  ;;  %v538_v20 = vrot.slane %v536_v11, 7 }
  0xc5   : > { %626 = vst [vmem:[#allocation2 + $0x50] sm:$0x1] %v625_v19  ;;  %v546_v21 = vrot.slane %v544_v15, 7  ;;  %v547_v22 = vshll.u32 %v413_v52, 16  ;;  %v797_v24 = vrot.slane %v795_v3, 1 }
  0xc6   : > { %v792_v23 = vrot.slane %v790_v16, 1  ;;  %v882_v25 = vsel %vm867_vm10, %v880_v18, %v881_v4  ;;  %v627_v26 = vld [vmem:[#allocation2 + $0x54] sm:$0xf]  ;;  %v541_v27 = vor.u32 %v539_v13, %v538_v20  ;;  %v542_v28 = vrot.slane %v538_v20, 4 }
  0xc7   : > { %3568 = vmatprep.mubr.bf16.mxu1 %v882_v25  ;;  %v549_v30 = vor.u32 %v547_v22, %v546_v21  ;;  %v551_v31 = vrot.slane %v546_v21, 4  ;;  %1156 = vmatmul.mubr.bf16.gmra.mrb[12].mxu0 %v4404_v0  ;;  %v3785_v25 = vld [vmem:[#allocation8 + $0x40] sm:$0xff]  }
  0xc8   : > { %v793_v33 = vor.u32 %v792_v23, %v788_v29  ;;  %v645_v34 = vld [vmem:[#allocation2 + $0x40] sm:$0xf]  ;;  %v631_v35 = vld [vmem:[#allocation2 + $0x5c] sm:$0x1]  ;;  %v628_v39 = vsel %vm4335_vm8, %v541_v27, %v627_v26  ;;  %3448 = vmatprep.subr.bf16.mxu1 %v3785_v25 }
  0xc9   : > { %v663_v36 = vld [vmem:[#allocation2 + $0x3c] sm:$0xe]  ;;  %v550_v38 = vsel %vm4327_vm7, %v542_v28, %v549_v30  ;;  %v632_v10 = vsel %vm4304_vm3, %v551_v31, %v631_v35  ;;  %v3776_v41 = vld [vmem:[#allocation2 + $0x44] ss:$0 sps:$4 sm:$0x11]   ;;  %v3788_v28 = vld [vmem:[#allocation8 + $0x48] sm:$0xff]  }
  0xca   : > { %v644_v37 = vld [vmem:[#allocation2 + $0x3c] sm:$0xf]  ;;  %v798_v40 = vsel %vm738_vm9, %v793_v33, %v797_v24  ;;  %v3161_v42 = vcombine.low %v663_v36, %v645_v34  ;;  %v647_v45 = vld [vmem:[#allocation2 + $0x4c] sm:$0xf]  ;;  %629 = vst [vmem:[#allocation2 + $0x54] sm:$0xf] %v628_v39 }
  0xcb   : > { %v3145_v44 = vcombine.low %v644_v37, %v645_v34  ;;  %630 = vst [vmem:[#allocation2 + $0x58] sm:$0xf] %v550_v38  ;;  %633 = vst [vmem:[#allocation2 + $0x5c] sm:$0x1] %v632_v10  ;;  %1163 = vmatprep.mubr.bf16.mxu0 %v798_v40  ;;  %v646_v47 = vld [vmem:[#allocation2 + $0x48] sm:$0xf] }
  0xcc   : > { %v664_v49 = vld [vmem:[#allocation2 + $0x48] sm:$0xe]  ;;  %v883_v50 = vrot.slane %v3161_v42, 1  ;;  %v884_v51 = vrot.slane %v3776_v41, 1  ;;  %v807_v52 = vshll.u32 %v3776_v41, 16  ;;  %v3146_v56 = vcombine.low %v646_v47, %v647_v45  ;;  %v3786_v26 = vld [vmem:[#allocation8] sm:$0xff]  }
  0xcd   : > { %v800_v54 = vshrl.u32 %v3145_v44, 16  ;;  %v802_v55 = vshll.u32 %v3145_v44, 16  ;;  %v3780_v59 = vld [vmem:[#allocation2 + $0x50] ss:$0 sps:$4 sm:$0x11]   ;;  %v3162_v0 = vcombine.low %v664_v49, %v647_v45  ;;  %3449 = vmatpush3.bf16.msra.mxu1 %v3786_v26  ;;  %v3787_v27 = vld [vmem:[#allocation8 + $0x80] sm:$0xff]  }
  0xce   : > { %v885_v60 = vsel %vm867_vm10, %v883_v50, %v884_v51  ;;  %v809_v58 = vrot.slane %v807_v52, 1  ;;  %v812_v62 = vshrl.u32 %v3146_v56, 16  ;;  %v814_v63 = vshll.u32 %v3146_v56, 16  ;;  %3576 = vmatprep.subr.bf16.mxu0 %v3787_v27  ;;  %3450 = vmatprep.subr.bf16.mxu1 %v3788_v28  ;;  %v3789_v30 = vld [vmem:[#allocation8 + $0x8] sm:$0xff]   ;;  %v3790_v33 = vld [vmem:[#allocation8 + $0x50] sm:$0xff]   ;;  %v3793_v36 = vld [vmem:[#allocation8 + $0x58] sm:$0xff]  }
  0xcf   : > { %v804_v61 = vrot.slane %v802_v55, 1  ;;  %3569 = vmatmul.mubr.bf16.gmra.mrb[8].mxu1 %v885_v60  ;;  %v819_v32 = vshll.u32 %v3780_v59, 16  ;;  %v886_v1 = vrot.slane %v3162_v0, 1  ;;  %v887_v2 = vrot.slane %v3780_v59, 1  ;;  %1164 = vmatmul.mubr.bf16.gmra.mrb[16].mxu0 %v4444_v7  ;;  %v3791_v31 = vld [vmem:[#allocation8 + $0x88] sm:$0xff]   ;;  %v3792_v34 = vld [vmem:[#allocation8 + $0x10] sm:$0xff]  }
  0xd0   : > { %v816_v3 = vrot.slane %v814_v63, 1  ;;  %3577 = vmatpush3.bf16.msra.mxu0 %v3787_v27  ;;  %v3794_v35 = vld [vmem:[#allocation8 + $0x90] sm:$0xff]   ;;  %v3795_v37 = vld [vmem:[#allocation8 + $0x18] sm:$0xff]   ;;  %v3796_v39 = vld [vmem:[#allocation8 + $0x60] sm:$0xff]  }
  0xd1   : > { %v805_v48 = vor.u32 %v804_v61, %v800_v54  ;;  %v821_v6 = vrot.slane %v819_v32, 1  ;;  %v888_v8 = vsel %vm867_vm10, %v886_v1, %v887_v2  ;;  %v665_v17 = vld [vmem:[#allocation2 + $0x54] sm:$0xe]  ;;  %3451 = vmatpush3.bf16.msra.mxu1 %v3789_v30  ;;  %3578 = vmatprep.subr.bf16.mxu0 %v3791_v31  ;;  %v3797_v38 = vld [vmem:[#allocation8 + $0x98] sm:$0xff]   ;;  %v3798_v10 = vld [vmem:[#allocation8 + $0x20] sm:$0xff]  }
  0xd2   : > { %v649_v4 = vld [vmem:[#allocation2 + $0x58] sm:$0xf]  ;;  %v3782_v9 = vld [vmem:[#allocation2 + $0x5c] ss:$0 sps:$4 sm:$0x11]   ;;  %3572 = vmatprep.mubr.bf16.mxu1 %v888_v8  ;;  %v817_v43 = vor.u32 %v816_v3, %v812_v62  ;;  %3452 = vmatprep.subr.bf16.mxu1 %v3790_v33  ;;  %v3800_v40 = vld [vmem:[#allocation8 + $0xa0] sm:$0xff]  }
  0xd3   : > { %v810_v5 = vsel %vm738_vm9, %v805_v48, %v809_v58  ;;  %v3163_v11 = vcombine.low %v665_v17, %v649_v4  ;;  %v648_v12 = vld [vmem:[#allocation2 + $0x54] sm:$0xf]  ;;  %v890_v13 = vrot.slane %v3782_v9, 1  ;;  %v831_v29 = vshll.u32 %v3782_v9, 16  ;;  %v3799_v41 = vld [vmem:[#allocation8 + $0x68] sm:$0xff]   ;;  %v3805_v50 = vld [vmem:[#allocation8 + $0x78] sm:$0xff]  }
  0xd4   : > { %1171 = vmatprep.mubr.bf16.mxu0 %v810_v5  ;;  %v3147_v15 = vcombine.low %v648_v12, %v649_v4  ;;  %v822_v20 = vsel %vm738_vm9, %v817_v43, %v821_v6  ;;  %3579 = vmatpush3.bf16.msra.mxu0 %v3791_v31  ;;  %v3801_v42 = vld [vmem:[#allocation8 + $0x28] sm:$0xff]   ;;  %v3802_v45 = vld [vmem:[#allocation8 + $0x70] sm:$0xff]   ;;  %v3810_v51 = vld [vmem:[#allocation8 + $0x38] sm:$0xff]  }
  0xd5   : > { %v889_v16 = vrot.slane %v3163_v11, 1  ;;  %v833_v22 = vrot.slane %v831_v29, 1  ;;  %3453 = vmatpush3.bf16.msra.mxu1 %v3792_v34  ;;  %3580 = vmatprep.subr.bf16.mxu0 %v3794_v35  ;;  %v3804_v47 = vld [vmem:[#allocation8 + $0x30] sm:$0xff]   ;;  %v3811_v54 = vld [vmem:[#allocation8 + $0xb8] sm:$0xff]   ;;  %v4473_v60 = vld [vmem:[%s4851_s2] ss:$0 sm:$0xff] }
  0xd6   : > { %v824_v18 = vshrl.u32 %v3147_v15, 16  ;;  %v826_v19 = vshll.u32 %v3147_v15, 16  ;;  %3454 = vmatprep.subr.bf16.mxu1 %v3793_v36  ;;  %v3806_v49 = vld [vmem:[#allocation8 + $0xb0] sm:$0xff]   ;;  %v1520_v33 = vld [vmem:[#allocation2 + $0x8] sm:$0x1] }
  0xd7   : > { %v891_v7 = vsel %vm867_vm10, %v889_v16, %v890_v13  ;;  %1172 = vmatmul.mubr.bf16.gmra.mrb[20].mxu0 %v3145_v44  ;;  %v3803_v44 = vld [vmem:[#allocation8 + $0xa8] sm:$0xff]  }
  0xd8   : > { %3573 = vmatmul.mubr.bf16.gmra.mrb[12].mxu1 %v891_v7  ;;  %v828_v21 = vrot.slane %v826_v19, 1  ;;  %1179 = vmatprep.mubr.bf16.mxu0 %v822_v20 }
  0xd9   : > { %3581 = vmatpush3.bf16.msra.mxu0 %v3794_v35  ;;  %3455 = vmatpush3.bf16.msra.mxu1 %v3795_v37 }
  0xda   : > { %v829_v23 = vor.u32 %v828_v21, %v824_v18  ;;  %3582 = vmatprep.subr.bf16.mxu0 %v3797_v38  ;;  %3456 = vmatprep.subr.bf16.mxu1 %v3796_v39 }
  0xdc   : > { %v834_v24 = vsel %vm738_vm9, %v829_v23, %v833_v22 }
  0xdd   : > { %3583 = vmatpush3.bf16.msra.mxu0 %v3797_v38  ;;  %3457 = vmatpush3.bf16.msra.mxu1 %v3798_v10 }
  0xde   : > { %3584 = vmatprep.subr.bf16.mxu0 %v3800_v40  ;;  %3458 = vmatprep.subr.bf16.mxu1 %v3799_v41 }
  0xdf   : > { %1180 = vmatmul.mubr.bf16.gmra.mrb[24].mxu0 %v3146_v56 }
  0xe0   : > { %1187 = vmatprep.mubr.bf16.mxu0 %v834_v24 }
  0xe1   : > { %3585 = vmatpush3.bf16.msra.mxu0 %v3800_v40  ;;  %3459 = vmatpush3.bf16.msra.mxu1 %v3801_v42 }
  0xe2   : > { %3586 = vmatprep.subr.bf16.mxu0 %v3803_v44  ;;  %3460 = vmatprep.subr.bf16.mxu1 %v3802_v45 }
  0xe5   : > { %3587 = vmatpush3.bf16.msra.mxu0 %v3803_v44  ;;  %3461 = vmatpush3.bf16.msra.mxu1 %v3804_v47 }
  0xe6   : > { %3588 = vmatprep.subr.bf16.mxu0 %v3806_v49  ;;  %3462 = vmatprep.subr.bf16.mxu1 %v3805_v50 }
  0xe7   : > { %1188 = vmatmul.mubr.bf16.gmra.mrb[28].mxu0 %v3147_v15 }
  0xe9   : > { %3589 = vmatpush3.bf16.msra.mxu0 %v3806_v49  ;;  %3463 = vmatpush3.bf16.msra.mxu1 %v3810_v51 }
  0xea   : > { %3590 = vmatprep.subr.bf16.mxu0 %v3811_v54 }
  0xed   : > { %3591 = vmatpush3.bf16.msra.mxu0 %v3811_v54 }
 0x182   : > { %v3562_v55 = vpop.f32.mrb[0].mxu1  ;;  %v3384_v56 = vpop.f32.mrb[0].mxu0 }
 0x183   : > { %v1230_v52 = vpop.f32.mrb[1].mxu1  ;;  %v3385_v0 = vpop.f32.mrb[1].mxu0 }
 0x184   : > { %v3563_v59 = vpop.f32.mrb[2].mxu1  ;;  %v3386_v58 = vadd.f32 %v3385_v0, %v3384_v56  ;;  %v3387_v62 = vpop.f32.mrb[2].mxu0 }
 0x185   : > { %v1233_v61 = vpop.f32.mrb[3].mxu1  ;;  %v3388_v63 = vpop.f32.mrb[3].mxu0 }
 0x186   : > { %v1134_v32 = vadd.f32 %v3386_v58, %v4473_v60  ;;  %v3389_v48 = vadd.f32 %v3388_v63, %v3387_v62 }
 0x188   : > { %v1231_v1 = vadd.f32 %v1230_v52, %v1134_v32  ;;  %v1137_v2 = vadd.f32 %v3389_v48, %v4473_v60 }
 0x18a   : > { %v1293_v4 = vmax.f32 %v1231_v1, 0.0  ;;  %v1234_v5 = vadd.f32 %v1233_v61, %v1137_v2  ;;  %v3390_v6 = vpop.f32.mrb[4].mxu0 }
 0x18b   : > { %v4477_v3 = vpop.f32.mrb[4].mxu1  ;;  %v3391_v17 = vpop.f32.mrb[5].mxu0 }
 0x18c   : > { %v1246_v8 = vpop.f32.mrb[5].mxu1  ;;  %v3295_v11 = vpack.c.bf16 %v1293_v4, %v1293_v4  ;;  %v1294_v12 = vmax.f32 %v1234_v5, 0.0  ;;  %v3392_v43 = vadd.f32 %v3391_v17, %v3390_v6  ;;  %v3393_v13 = vpop.f32.mrb[6].mxu0  ;;  %v1527_v4 = vld [vmem:[#allocation2 + $0x14] sm:$0x1] }
 0x18d   : > { %v4479_v9 = vpop.f32.mrb[6].mxu1  ;;  %v3394_v29 = vpop.f32.mrb[7].mxu0 }
 0x18e   : > { %v1249_v15 = vpop.f32.mrb[7].mxu1  ;;  %v1358_v16 = vshrl.u32 %v3295_v11, 16  ;;  %v3296_v18 = vpack.c.bf16 %v1294_v12, %v1294_v12  ;;  %v1142_v19 = vadd.f32 %v3392_v43, %v4473_v60  ;;  %v3395_v7 = vadd.f32 %v3394_v29, %v3393_v13 }
 0x18f   : > { %v1361_v21 = vshll.u32 %v3295_v11, 16 }
 0x190   : > { %v1360_v20 = vrot.slane %v1358_v16, 7  ;;  %v1366_v22 = vshrl.u32 %v3296_v18, 16  ;;  %v1239_v23 = vadd.f32 %v3562_v55, %v1142_v19  ;;  %v1145_v24 = vadd.f32 %v3395_v7, %v4473_v60  ;;  %v1523_v55 = vld [vmem:[#allocation2 + $0xc] sm:$0xf] }
 0x191   : > { %v1369_v27 = vshll.u32 %v3296_v18, 16 }
 0x192   : > { %v1363_v25 = vor.u32 %v1361_v21, %v1360_v20  ;;  %v1368_v26 = vrot.slane %v1366_v22, 7  ;;  %v1295_v28 = vmax.f32 %v1239_v23, 0.0  ;;  %v3396_v30 = vpop.f32.mrb[8].mxu0  ;;  %v1364_v31 = vrot.slane %v1360_v20, 4 }
 0x193   : > { %v1242_v34 = vadd.f32 %v3563_v59, %v1145_v24  ;;  %v3397_v35 = vpop.f32.mrb[9].mxu0 }
 0x194   : > { %v1517_v36 = vsel %vm4335_vm8, %v1363_v25, %v4380_v53  ;;  %v1371_v37 = vor.u32 %v1369_v27, %v1368_v26  ;;  %v1373_v38 = vrot.slane %v1368_v26, 4  ;;  %v3297_v39 = vpack.c.bf16 %v1295_v28, %v1295_v28  ;;  %v3399_v10 = vpop.f32.mrb[10].mxu0 }
 0x195   : > { %1518 = vst [vmem:[#allocation2] sm:$0xf] %v1517_v36  ;;  %v1296_v40 = vmax.f32 %v1242_v34, 0.0  ;;  %v3398_v41 = vadd.f32 %v3397_v35, %v3396_v30  ;;  %v3400_v42 = vpop.f32.mrb[11].mxu0 }
 0x196   : > { %v1372_v44 = vsel %vm4327_vm7, %v1364_v31, %v1371_v37  ;;  %v1521_v45 = vsel %vm4304_vm3, %v1373_v38, %v1520_v33  ;;  %v1375_v47 = vshrl.u32 %v3297_v39, 16  ;;  %v3401_v50 = vadd.f32 %v3400_v42, %v3399_v10  ;;  %v1530_v31 = vld [vmem:[#allocation2 + $0x18] sm:$0xf] }
 0x197   : > { %1519 = vst [vmem:[#allocation2 + $0x4] sm:$0xf] %v1372_v44  ;;  %1522 = vst [vmem:[#allocation2 + $0x8] sm:$0x1] %v1521_v45  ;;  %v3298_v49 = vpack.c.bf16 %v1296_v40, %v1296_v40  ;;  %v1150_v53 = vadd.f32 %v3398_v41, %v4473_v60  ;;  %v1378_v54 = vshll.u32 %v3297_v39, 16 }
 0x198   : > { %v1377_v51 = vrot.slane %v1375_v47, 7  ;;  %v1153_v59 = vadd.f32 %v3401_v50, %v4473_v60 }
 0x199   : > { %v1383_v52 = vshrl.u32 %v3298_v49, 16  ;;  %v1247_v56 = vadd.f32 %v1246_v8, %v1150_v53  ;;  %v1386_v62 = vshll.u32 %v3298_v49, 16 }
 0x19a   : > { %v1380_v0 = vor.u32 %v1378_v54, %v1377_v51  ;;  %v3402_v61 = vpop.f32.mrb[12].mxu0  ;;  %v1250_v32 = vadd.f32 %v1249_v15, %v1153_v59  ;;  %v1381_v1 = vrot.slane %v1377_v51, 4 }
 0x19b   : > { %v1385_v58 = vrot.slane %v1383_v52, 7  ;;  %v1297_v63 = vmax.f32 %v1247_v56, 0.0  ;;  %v3403_v48 = vpop.f32.mrb[13].mxu0  ;;  %v1534_v52 = vld [vmem:[#allocation2 + $0x20] sm:$0x1] }
 0x19c   : > { %v1524_v2 = vsel %vm4335_vm8, %v1380_v0, %v1523_v55  ;;  %v3404_v5 = vadd.f32 %v3403_v48, %v3402_v61  ;;  %v3405_v6 = vpop.f32.mrb[14].mxu0  ;;  %v1298_v12 = vmax.f32 %v1250_v32, 0.0  ;;  %v4495_v16 = vld [vmem:[#allocation2] sm:$0xf] }
 0x19d   : > { %1525 = vst [vmem:[#allocation2 + $0xc] sm:$0xf] %v1524_v2  ;;  %v1388_v17 = vor.u32 %v1386_v62, %v1385_v58  ;;  %v1390_v11 = vrot.slane %v1385_v58, 4  ;;  %v3299_v8 = vpack.c.bf16 %v1297_v63, %v1297_v63  ;;  %v3406_v43 = vpop.f32.mrb[15].mxu0  ;;  %v1596_v27 = vld [vmem:[#allocation2] sm:$0xe] }
 0x19e   : > { %v1158_v13 = vadd.f32 %v3404_v5, %v4473_v60  ;;  %v3407_v29 = vadd.f32 %v3406_v43, %v3405_v6  ;;  %v1573_v15 = vld [vmem:[#allocation2 + $0x4] sm:$0xf]  ;;  %v3808_v22 = vld [vmem:[#allocation2 + $0x8] ss:$0 sps:$4 sm:$0x11]   ;;  %v3300_v23 = vpack.c.bf16 %v1298_v12, %v1298_v12 }
 0x19f   : > { %v1389_v18 = vsel %vm4327_vm7, %v1381_v1, %v1388_v17  ;;  %v1528_v19 = vsel %vm4304_vm3, %v1390_v11, %v1527_v4  ;;  %v1392_v7 = vshrl.u32 %v3299_v8, 16  ;;  %v1395_v20 = vshll.u32 %v3299_v8, 16 }
 0x1a0   : > { %1526 = vst [vmem:[#allocation2 + $0x10] sm:$0xf] %v1389_v18  ;;  %1529 = vst [vmem:[#allocation2 + $0x14] sm:$0x1] %v1528_v19  ;;  %v1255_v24 = vadd.f32 %v4477_v3, %v1158_v13  ;;  %v1161_v25 = vadd.f32 %v3407_v29, %v4473_v60  ;;  %v4506_v28 = vcombine.low %v4495_v16, %v1573_v15  ;;  %v1805_v34 = vrot.slane %v3808_v22, 1 }
 0x1a1   : > { %v1394_v30 = vrot.slane %v1392_v7, 7  ;;  %v3221_v33 = vcombine.low %v1596_v27, %v1573_v15  ;;  %v1684_v36 = vshll.u32 %v3808_v22, 16  ;;  %v1400_v37 = vshrl.u32 %v3300_v23, 16  ;;  %v1537_v13 = vld [vmem:[#allocation2 + $0x24] sm:$0xf] }
 0x1a2   : > { %v4501_v21 = vpop.f32.mrb[8].mxu1  ;;  %v1403_v38 = vshll.u32 %v3300_v23, 16  ;;  %v1299_v39 = vmax.f32 %v1255_v24, 0.0  ;;  %v1258_v10 = vadd.f32 %v4479_v9, %v1161_v25  ;;  %v3408_v3 = vpop.f32.mrb[16].mxu0  ;;  %v1677_v47 = vshrl.u32 %v4506_v28, 16 }
 0x1a3   : > { %v1262_v26 = vpop.f32.mrb[9].mxu1  ;;  %v1397_v41 = vor.u32 %v1395_v20, %v1394_v30  ;;  %v1398_v42 = vrot.slane %v1394_v30, 4  ;;  %v3409_v44 = vpop.f32.mrb[17].mxu0  ;;  %v1804_v45 = vrot.slane %v3221_v33, 1  ;;  %v1402_v49 = vrot.slane %v1400_v37, 7 }
 0x1a4   : > { %v4508_v35 = vpop.f32.mrb[10].mxu1  ;;  %v3301_v53 = vpack.c.bf16 %v1299_v39, %v1299_v39  ;;  %v1300_v50 = vmax.f32 %v1258_v10, 0.0  ;;  %v3410_v51 = vadd.f32 %v3409_v44, %v3408_v3  ;;  %v3411_v54 = vpop.f32.mrb[18].mxu0  ;;  %v1679_v59 = vshll.u32 %v4506_v28, 16  ;;  %v1597_v32 = vld [vmem:[#allocation2 + $0xc] sm:$0xe] }
 0x1a5   : > { %v1265_v40 = vpop.f32.mrb[11].mxu1  ;;  %v1531_v55 = vsel %vm4335_vm8, %v1397_v41, %v1530_v31  ;;  %v1806_v56 = vsel %vm867_vm10, %v1804_v45, %v1805_v34  ;;  %v3412_v9 = vpop.f32.mrb[19].mxu0  ;;  %v1686_v0 = vrot.slane %v1684_v36, 1  ;;  %v1405_v61 = vor.u32 %v1403_v38, %v1402_v49  ;;  %v1574_v27 = vld [vmem:[#allocation2 + $0xc] sm:$0xf] }
 0x1a6   : > { %1532 = vst [vmem:[#allocation2 + $0x18] sm:$0xf] %v1531_v55  ;;  %v1407_v58 = vrot.slane %v1402_v49, 4  ;;  %v1409_v62 = vshrl.u32 %v3301_v53, 16  ;;  %v1412_v63 = vshll.u32 %v3301_v53, 16  ;;  %3592 = vmatprep.mubr.bf16.mxu0 %v1806_v56  ;;  %v3302_v48 = vpack.c.bf16 %v1300_v50, %v1300_v50 }
 0x1a7   : > { %v1166_v1 = vadd.f32 %v3410_v51, %v4473_v60  ;;  %v3413_v2 = vadd.f32 %v3412_v9, %v3411_v54  ;;  %v1681_v4 = vrot.slane %v1679_v59, 1  ;;  %v1575_v5 = vld [vmem:[#allocation2 + $0x10] sm:$0xf]  ;;  %v1406_v6 = vsel %vm4327_vm7, %v1398_v42, %v1405_v61  ;;  %v4521_v8 = vld [vmem:[#allocation2 + $0x14] ss:$0 sps:$4 sm:$0x11]  }
 0x1a8   : > { %v1535_v17 = vsel %vm4304_vm3, %v1407_v58, %v1534_v52  ;;  %v1411_v11 = vrot.slane %v1409_v62, 7  ;;  %v3222_v12 = vcombine.low %v1597_v32, %v1575_v5  ;;  %1533 = vst [vmem:[#allocation2 + $0x1c] sm:$0xf] %v1406_v6  ;;  %v1417_v29 = vshrl.u32 %v3302_v48, 16  ;;  %v1541_v39 = vld [vmem:[#allocation2 + $0x2c] sm:$0x1] }
 0x1a9   : > { %1536 = vst [vmem:[#allocation2 + $0x20] sm:$0x1] %v1535_v17  ;;  %v1420_v15 = vshll.u32 %v3302_v48, 16  ;;  %v1263_v18 = vadd.f32 %v1262_v26, %v1166_v1  ;;  %v1169_v19 = vadd.f32 %v3413_v2, %v4473_v60  ;;  %v1682_v23 = vor.u32 %v1681_v4, %v1677_v47 }
 0x1aa   : > { %v1414_v20 = vor.u32 %v1412_v63, %v1411_v11  ;;  %v1415_v22 = vrot.slane %v1411_v11, 4  ;;  %v3414_v24 = vpop.f32.mrb[20].mxu0  ;;  %v1807_v25 = vrot.slane %v3222_v12, 1  ;;  %v1419_v31 = vrot.slane %v1417_v29, 7 }
 0x1ab   : > { %v4523_v43 = vpop.f32.mrb[12].mxu1  ;;  %v1301_v33 = vmax.f32 %v1263_v18, 0.0  ;;  %v1266_v34 = vadd.f32 %v1265_v40, %v1169_v19  ;;  %v3415_v36 = vpop.f32.mrb[21].mxu0  ;;  %v1808_v37 = vrot.slane %v4521_v8, 1  ;;  %v1687_v10 = vsel %vm738_vm9, %v1682_v23, %v1686_v0 }
 0x1ac   : > { %v4526_v7 = vpop.f32.mrb[13].mxu1  ;;  %v1538_v26 = vsel %vm4335_vm8, %v1414_v20, %v1537_v13  ;;  %v3416_v3 = vadd.f32 %v3415_v36, %v3414_v24  ;;  %v3417_v41 = vpop.f32.mrb[22].mxu0  ;;  %v4536_v42 = vcombine.low %v1574_v27, %v1575_v5  ;;  %v1422_v44 = vor.u32 %v1420_v15, %v1419_v31  ;;  %2067 = vmatprep.mubr.bf16.mxu1 %v1687_v10  ;;  %v1544_v5 = vld [vmem:[#allocation2 + $0x30] sm:$0xf]  ;;  %v1548_v27 = vld [vmem:[#allocation2 + $0x38] sm:$0x1] }
 0x1ad   : > { %v4528_v30 = vpop.f32.mrb[14].mxu1  ;;  %1539 = vst [vmem:[#allocation2 + $0x24] sm:$0xf] %v1538_v26  ;;  %v1424_v45 = vrot.slane %v1419_v31, 4  ;;  %v3303_v47 = vpack.c.bf16 %v1301_v33, %v1301_v33  ;;  %v1302_v40 = vmax.f32 %v1266_v34, 0.0  ;;  %v3418_v49 = vpop.f32.mrb[23].mxu0  ;;  %2068 = vmatmul.mubr.bf16.vlgmr.msra.gmra.mrb[16].mxu1 %v4506_v28  ;;  %v1809_v50 = vsel %vm867_vm10, %v1807_v25, %v1808_v37 }
 0x1ae   : > { %v4531_v38 = vpop.f32.mrb[15].mxu1  ;;  %v1174_v53 = vadd.f32 %v3416_v3, %v4473_v60  ;;  %v3419_v51 = vadd.f32 %v3418_v49, %v3417_v41  ;;  %v1689_v54 = vshrl.u32 %v4536_v42, 16  ;;  %v1423_v55 = vsel %vm4327_vm7, %v1415_v22, %v1422_v44  ;;  %3593 = vmatmul.mubr.bf16.vlgmr.msra.gmra.mrb[32].mxu0 %v1809_v50  ;;  %v1576_v59 = vld [vmem:[#allocation2 + $0x18] sm:$0xf]  ;;  %v1551_v50 = vld [vmem:[#allocation2 + $0x3c] sm:$0xf] }
 0x1af   : > { %v1542_v52 = vsel %vm4304_vm3, %v1424_v45, %v1541_v39  ;;  %v1426_v56 = vshrl.u32 %v3303_v47, 16  ;;  %v1429_v9 = vshll.u32 %v3303_v47, 16  ;;  %v1598_v0 = vld [vmem:[#allocation2 + $0x18] sm:$0xe]  ;;  %1540 = vst [vmem:[#allocation2 + $0x28] sm:$0xf] %v1423_v55  ;;  %v3304_v28 = vpack.c.bf16 %v1302_v40, %v1302_v40 }
 0x1b0   : > { %1543 = vst [vmem:[#allocation2 + $0x2c] sm:$0x1] %v1542_v52  ;;  %v1271_v61 = vadd.f32 %v4501_v21, %v1174_v53  ;;  %v1177_v58 = vadd.f32 %v3419_v51, %v4473_v60  ;;  %v1691_v62 = vshll.u32 %v4536_v42, 16  ;;  %v1577_v63 = vld [vmem:[#allocation2 + $0x1c] sm:$0xf]  ;;  %v1696_v48 = vshll.u32 %v4521_v8, 16 }
 0x1b1   : > { %v1428_v32 = vrot.slane %v1426_v56, 7  ;;  %v4550_v1 = vcombine.low %v1576_v59, %v1577_v63  ;;  %v4552_v2 = vld [vmem:[#allocation2 + $0x20] ss:$0 sps:$4 sm:$0x11]   ;;  %v3223_v4 = vcombine.low %v1598_v0, %v1577_v63  ;;  %v1434_v6 = vshrl.u32 %v3304_v28, 16 }
 0x1b2   : > { %v1437_v17 = vshll.u32 %v3304_v28, 16  ;;  %v1303_v11 = vmax.f32 %v1271_v61, 0.0  ;;  %v1274_v12 = vadd.f32 %v4508_v35, %v1177_v58  ;;  %v3420_v21 = vpop.f32.mrb[24].mxu0  ;;  %v1693_v15 = vrot.slane %v1691_v62, 1 }
 0x1b3   : > { %v1431_v13 = vor.u32 %v1429_v9, %v1428_v32  ;;  %v1432_v29 = vrot.slane %v1428_v32, 4  ;;  %v1698_v18 = vrot.slane %v1696_v48, 1  ;;  %v3421_v19 = vpop.f32.mrb[25].mxu0  ;;  %v1436_v20 = vrot.slane %v1434_v6, 7 }
 0x1b4   : > { %v3305_v22 = vpack.c.bf16 %v1303_v11, %v1303_v11  ;;  %v1304_v8 = vmax.f32 %v1274_v12, 0.0  ;;  %v3422_v23 = vadd.f32 %v3421_v19, %v3420_v21  ;;  %v3423_v24 = vpop.f32.mrb[26].mxu0  ;;  %v1694_v31 = vor.u32 %v1693_v15, %v1689_v54  ;;  %v1578_v61 = vld [vmem:[#allocation2 + $0x24] sm:$0xf] }
 0x1b5   : > { %v1545_v25 = vsel %vm4335_vm8, %v1431_v13, %v1544_v5  ;;  %v1810_v33 = vrot.slane %v3223_v4, 1  ;;  %v1811_v34 = vrot.slane %v4552_v2, 1  ;;  %v3424_v35 = vpop.f32.mrb[27].mxu0  ;;  %v1439_v36 = vor.u32 %v1437_v17, %v1436_v20  ;;  %v1599_v11 = vld [vmem:[#allocation2 + $0x24] sm:$0xe] }
 0x1b6   : > { %1546 = vst [vmem:[#allocation2 + $0x30] sm:$0xf] %v1545_v25  ;;  %v1441_v37 = vrot.slane %v1436_v20, 4  ;;  %v1443_v26 = vshrl.u32 %v3305_v22, 16  ;;  %v1446_v39 = vshll.u32 %v3305_v22, 16  ;;  %v3306_v10 = vpack.c.bf16 %v1304_v8, %v1304_v8 }
 0x1b7   : > { %v1699_v3 = vsel %vm738_vm9, %v1694_v31, %v1698_v18  ;;  %v1182_v41 = vadd.f32 %v3422_v23, %v4473_v60  ;;  %v1812_v44 = vsel %vm867_vm10, %v1810_v33, %v1811_v34  ;;  %v1440_v45 = vsel %vm4327_vm7, %v1432_v29, %v1439_v36  ;;  %v1579_v53 = vld [vmem:[#allocation2 + $0x28] sm:$0xf]  ;;  %v3819_v15 = vld [vmem:[#allocation2 + $0x2c] ss:$0 sps:$4 sm:$0x11]  }
 0x1b8   : > { %v1549_v47 = vsel %vm4304_vm3, %v1441_v37, %v1548_v27  ;;  %v1445_v40 = vrot.slane %v1443_v26, 7  ;;  %2075 = vmatprep.mubr.bf16.mxu1 %v1699_v3  ;;  %3596 = vmatprep.mubr.bf16.mxu0 %v1812_v44  ;;  %v3425_v49 = vadd.f32 %v3424_v35, %v3423_v24  ;;  %1547 = vst [vmem:[#allocation2 + $0x34] sm:$0xf] %v1440_v45  ;;  %v1451_v51 = vshrl.u32 %v3306_v10, 16  ;;  %v1558_v35 = vld [vmem:[#allocation2 + $0x48] sm:$0xf] }
 0x1b9   : > { %1550 = vst [vmem:[#allocation2 + $0x38] sm:$0x1] %v1549_v47  ;;  %v1454_v54 = vshll.u32 %v3306_v10, 16  ;;  %2076 = vmatmul.mubr.bf16.gmra.mrb[20].mxu1 %v4536_v42  ;;  %v1279_v55 = vadd.f32 %v4526_v7, %v1182_v41  ;;  %v1701_v52 = vshrl.u32 %v4550_v1, 16  ;;  %v1703_v0 = vshll.u32 %v4550_v1, 16 }
 0x1ba   : > { %v1448_v56 = vor.u32 %v1446_v39, %v1445_v40  ;;  %v1449_v9 = vrot.slane %v1445_v40, 4  ;;  %v1185_v59 = vadd.f32 %v3425_v49, %v4473_v60  ;;  %v3426_v28 = vpop.f32.mrb[28].mxu0  ;;  %v1453_v58 = vrot.slane %v1451_v51, 7  ;;  %v1555_v42 = vld [vmem:[#allocation2 + $0x44] sm:$0x1] }
 0x1bb   : > { %v1305_v62 = vmax.f32 %v1279_v55, 0.0  ;;  %v1708_v63 = vshll.u32 %v4552_v2, 16  ;;  %v3427_v32 = vpop.f32.mrb[29].mxu0  ;;  %v4571_v48 = vcombine.low %v1578_v61, %v1579_v53  ;;  %v1705_v5 = vrot.slane %v1703_v0, 1 }
 0x1bc   : > { %v1552_v7 = vsel %vm4335_vm8, %v1448_v56, %v1551_v50  ;;  %v1282_v4 = vadd.f32 %v4531_v38, %v1185_v59  ;;  %v3428_v6 = vadd.f32 %v3427_v32, %v3426_v28  ;;  %v3429_v17 = vpop.f32.mrb[30].mxu0  ;;  %v1456_v12 = vor.u32 %v1454_v54, %v1453_v58  ;;  %v1562_v56 = vld [vmem:[#allocation2 + $0x50] sm:$0x1] }
 0x1bd   : > { %1553 = vst [vmem:[#allocation2 + $0x3c] sm:$0xf] %v1552_v7  ;;  %v1458_v21 = vrot.slane %v1453_v58, 4  ;;  %v3307_v13 = vpack.c.bf16 %v1305_v62, %v1305_v62  ;;  %v1710_v29 = vrot.slane %v1708_v63, 1  ;;  %v3430_v2 = vpop.f32.mrb[31].mxu0  ;;  %v1706_v19 = vor.u32 %v1705_v5, %v1701_v52 }
 0x1be   : > { %v1306_v18 = vmax.f32 %v1282_v4, 0.0  ;;  %v1190_v20 = vadd.f32 %v3428_v6, %v4473_v60  ;;  %v3224_v22 = vcombine.low %v1599_v11, %v1579_v53  ;;  %v1457_v8 = vsel %vm4327_vm7, %v1449_v9, %v1456_v12  ;;  %v1580_v49 = vld [vmem:[#allocation2 + $0x30] sm:$0xf] }
 0x1bf   : > { %v1556_v38 = vsel %vm4304_vm3, %v1458_v21, %v1555_v42  ;;  %v1460_v23 = vshrl.u32 %v3307_v13, 16  ;;  %v1463_v24 = vshll.u32 %v3307_v13, 16  ;;  %1554 = vst [vmem:[#allocation2 + $0x40] sm:$0xf] %v1457_v8  ;;  %v1711_v27 = vsel %vm738_vm9, %v1706_v19, %v1710_v29  ;;  %v1581_v44 = vld [vmem:[#allocation2 + $0x34] sm:$0xf] }
 0x1c0   : > { %1557 = vst [vmem:[#allocation2 + $0x44] sm:$0x1] %v1556_v38  ;;  %v3308_v25 = vpack.c.bf16 %v1306_v18, %v1306_v18  ;;  %v1287_v31 = vadd.f32 %v4523_v43, %v1190_v20  ;;  %v1813_v33 = vrot.slane %v3224_v22, 1  ;;  %2083 = vmatprep.mubr.bf16.mxu1 %v1711_v27  ;;  %v1814_v36 = vrot.slane %v3819_v15, 1  ;;  %v1600_v53 = vld [vmem:[#allocation2 + $0x30] sm:$0xe] }
 0x1c1   : > { %v1462_v34 = vrot.slane %v1460_v23, 7  ;;  %v3431_v37 = vadd.f32 %v3430_v2, %v3429_v17  ;;  %v1713_v26 = vshrl.u32 %v4571_v48, 16  ;;  %2084 = vmatmul.mubr.bf16.gmra.mrb[24].mxu1 %v4550_v1  ;;  %v1715_v41 = vshll.u32 %v4571_v48, 16  ;;  %v3822_v52 = vld [vmem:[#allocation2 + $0x38] ss:$0 sps:$4 sm:$0x11]  }
 0x1c2   : > { %v1468_v39 = vshrl.u32 %v3308_v25, 16  ;;  %v1471_v10 = vshll.u32 %v3308_v25, 16  ;;  %v1307_v3 = vmax.f32 %v1287_v31, 0.0  ;;  %v1815_v43 = vsel %vm867_vm10, %v1813_v33, %v1814_v36  ;;  %v1565_v17 = vld [vmem:[#allocation2 + $0x54] sm:$0xf] }
 0x1c3   : > { %v1465_v45 = vor.u32 %v1463_v24, %v1462_v34  ;;  %v1466_v47 = vrot.slane %v1462_v34, 4  ;;  %v1193_v40 = vadd.f32 %v3431_v37, %v4473_v60  ;;  %3597 = vmatmul.mubr.bf16.gmra.mrb[36].mxu0 %v1815_v43  ;;  %v1717_v54 = vrot.slane %v1715_v41, 1  ;;  %v1569_v37 = vld [vmem:[#allocation2 + $0x5c] sm:$0x1] }
 0x1c4   : > { %v1470_v50 = vrot.slane %v1468_v39, 7  ;;  %v3309_v51 = vpack.c.bf16 %v1307_v3, %v1307_v3  ;;  %v1720_v55 = vshll.u32 %v3819_v15, 16  ;;  %v4591_v59 = vcombine.low %v1580_v49, %v1581_v44  ;;  %v1582_v18 = vld [vmem:[#allocation2 + $0x3c] sm:$0xf] }
 0x1c5   : > { %v1559_v1 = vsel %vm4335_vm8, %v1465_v45, %v1558_v35  ;;  %v1290_v9 = vadd.f32 %v4528_v30, %v1193_v40  ;;  %v3225_v0 = vcombine.low %v1600_v53, %v1581_v44  ;;  %v1718_v63 = vor.u32 %v1717_v54, %v1713_v26  ;;  %v1601_v8 = vld [vmem:[#allocation2 + $0x3c] sm:$0xe] }
 0x1c6   : > { %1560 = vst [vmem:[#allocation2 + $0x48] sm:$0xf] %v1559_v1  ;;  %v1473_v28 = vor.u32 %v1471_v10, %v1470_v50  ;;  %v1475_v60 = vrot.slane %v1470_v50, 4  ;;  %v1477_v61 = vshrl.u32 %v3309_v51, 16  ;;  %v1480_v58 = vshll.u32 %v3309_v51, 16 }
 0x1c7   : > { %v1308_v62 = vmax.f32 %v1290_v9, 0.0  ;;  %v1722_v32 = vrot.slane %v1720_v55, 1  ;;  %v1816_v7 = vrot.slane %v3225_v0, 1  ;;  %v1817_v30 = vrot.slane %v3822_v52, 1  ;;  %v1583_v6 = vld [vmem:[#allocation2 + $0x40] sm:$0xf] }
 0x1c8   : > { %v1474_v42 = vsel %vm4327_vm7, %v1466_v47, %v1473_v28  ;;  %v1563_v4 = vsel %vm4304_vm3, %v1475_v60, %v1562_v56  ;;  %v1479_v5 = vrot.slane %v1477_v61, 7  ;;  %v1727_v21 = vshll.u32 %v4591_v59, 16  ;;  %v3825_v13 = vld [vmem:[#allocation2 + $0x44] ss:$0 sps:$4 sm:$0x11]  }
 0x1c9   : > { %1561 = vst [vmem:[#allocation2 + $0x4c] sm:$0xf] %v1474_v42  ;;  %1564 = vst [vmem:[#allocation2 + $0x50] sm:$0x1] %v1563_v4  ;;  %v3310_v11 = vpack.c.bf16 %v1308_v62, %v1308_v62  ;;  %v1723_v12 = vsel %vm738_vm9, %v1718_v63, %v1722_v32  ;;  %v1818_v15 = vsel %vm867_vm10, %v1816_v7, %v1817_v30  ;;  %v1732_v2 = vshll.u32 %v3822_v52, 16 }
 0x1ca   : > { %v1482_v29 = vor.u32 %v1480_v58, %v1479_v5  ;;  %2091 = vmatprep.mubr.bf16.mxu1 %v1723_v12  ;;  %3600 = vmatprep.mubr.bf16.mxu0 %v1818_v15  ;;  %v1725_v20 = vshrl.u32 %v4591_v59, 16  ;;  %v1729_v22 = vrot.slane %v1727_v21, 1  ;;  %v3210_v38 = vcombine.low %v1582_v18, %v1583_v6 }
 0x1cb   : > { %v1485_v19 = vshrl.u32 %v3310_v11, 16  ;;  %2092 = vmatmul.mubr.bf16.gmra.mrb[28].mxu1 %v4571_v48  ;;  %v1488_v24 = vshll.u32 %v3310_v11, 16  ;;  %v3226_v25 = vcombine.low %v1601_v8, %v1583_v6  ;;  %v1820_v27 = vrot.slane %v3825_v13, 1  ;;  %v3836_v8 = vld [vmem:[#allocation9 + $0x18] sm:$0xff]  }
 0x1cc   : > { %v1566_v23 = vsel %vm4335_vm8, %v1482_v29, %v1565_v17  ;;  %v1730_v33 = vor.u32 %v1729_v22, %v1725_v20  ;;  %v1734_v34 = vrot.slane %v1732_v2, 1  ;;  %v1739_v35 = vshll.u32 %v3210_v38, 16  ;;  %v3834_v20 = vld [vmem:[#allocation9 + $0x8] sm:$0xff]   ;;  %v3835_v22 = vld [vmem:[#allocation9 + $0x10] sm:$0xff]  }
 0x1cd   : > { %1567 = vst [vmem:[#allocation2 + $0x54] sm:$0xf] %v1566_v23  ;;  %v1487_v31 = vrot.slane %v1485_v19, 7  ;;  %v1483_v36 = vrot.slane %v1479_v5, 4  ;;  %v1819_v48 = vrot.slane %v3226_v25, 1  ;;  %v1737_v26 = vshrl.u32 %v3210_v38, 16 }
 0x1ce   : > { %v1744_v39 = vshll.u32 %v3825_v13, 16  ;;  %v1735_v41 = vsel %vm738_vm9, %v1730_v33, %v1734_v34  ;;  %v1741_v44 = vrot.slane %v1739_v35, 1  ;;  %v1584_v45 = vld [vmem:[#allocation2 + $0x48] sm:$0xf]  ;;  %v3833_v19 = vld [vmem:[#allocation9] sm:$0xff]   ;;  %v3840_v25 = vld [vmem:[#allocation9 + $0x38] sm:$0xff]  }
 0x1cf   : > { %v1490_v10 = vor.u32 %v1488_v24, %v1487_v31  ;;  %v1492_v3 = vrot.slane %v1487_v31, 4  ;;  %2099 = vmatprep.mubr.bf16.mxu1 %v1735_v41  ;;  %v1821_v47 = vsel %vm867_vm10, %v1819_v48, %v1820_v27  ;;  %v1602_v51 = vld [vmem:[#allocation2 + $0x48] sm:$0xe]  ;;  %3608 = vmatprep.subr.bf16.mxu0 %v3833_v19  ;;  %v3839_v24 = vld [vmem:[#allocation9 + $0x30] sm:$0xff]   ;;  %v4619_v34 = vld [vmem:[%s4853_s4] ss:$0 sm:$0xff] }
 0x1d0   : > { %v1746_v43 = vrot.slane %v1744_v39, 1  ;;  %v1585_v40 = vld [vmem:[#allocation2 + $0x4c] sm:$0xf]  ;;  %3601 = vmatmul.mubr.bf16.gmra.mrb[40].mxu0 %v1821_v47  ;;  %v1742_v50 = vor.u32 %v1741_v44, %v1737_v26  ;;  %v3828_v55 = vld [vmem:[#allocation2 + $0x50] ss:$0 sps:$4 sm:$0x11]   ;;  %3640 = vmatprep.subr.bf16.mxu1 %v3833_v19 }
 0x1d1   : > { %v1491_v49 = vsel %vm4327_vm7, %v1483_v36, %v1490_v10  ;;  %v1570_v53 = vsel %vm4304_vm3, %v1492_v3, %v1569_v37  ;;  %v3211_v54 = vcombine.low %v1584_v45, %v1585_v40  ;;  %v3227_v52 = vcombine.low %v1602_v51, %v1585_v40  ;;  %3609 = vmatpush3.bf16.msra.mxu0 %v3833_v19  ;;  %v3838_v23 = vld [vmem:[#allocation9 + $0x28] sm:$0xff]  }
 0x1d2   : > { %1568 = vst [vmem:[#allocation2 + $0x58] sm:$0xf] %v1491_v49  ;;  %1571 = vst [vmem:[#allocation2 + $0x5c] sm:$0x1] %v1570_v53  ;;  %v1747_v1 = vsel %vm738_vm9, %v1742_v50, %v1746_v43  ;;  %v1823_v56 = vrot.slane %v3828_v55, 1  ;;  %v1756_v28 = vshll.u32 %v3828_v55, 16  ;;  %3648 = vmatpush3.bf16.msra.mxu1 %v3833_v19  ;;  %3610 = vmatprep.subr.bf16.mxu0 %v3834_v20 }
 0x1d3   : > { %2100 = vmatmul.mubr.bf16.gmra.mrb[32].mxu1 %v4591_v59  ;;  %v1751_v9 = vshll.u32 %v3211_v54, 16  ;;  %v1822_v0 = vrot.slane %v3227_v52, 1  ;;  %v1749_v60 = vshrl.u32 %v3211_v54, 16  ;;  %3641 = vmatprep.subr.bf16.mxu1 %v3834_v20 }
 0x1d4   : > { %2107 = vmatprep.mubr.bf16.mxu1 %v1747_v1  ;;  %v1758_v63 = vrot.slane %v1756_v28, 1  ;;  %v1586_v32 = vld [vmem:[#allocation2 + $0x54] sm:$0xf] }
 0x1d5   : > { %v1753_v61 = vrot.slane %v1751_v9, 1  ;;  %v1824_v58 = vsel %vm867_vm10, %v1822_v0, %v1823_v56  ;;  %v1603_v4 = vld [vmem:[#allocation2 + $0x54] sm:$0xe]  ;;  %3611 = vmatpush3.bf16.msra.mxu0 %v3834_v20 }
 0x1d6   : > { %3604 = vmatprep.mubr.bf16.mxu0 %v1824_v58  ;;  %3649 = vmatpush3.bf16.msra.mxu1 %v3834_v20 }
 0x1d7   : > { %v1754_v62 = vor.u32 %v1753_v61, %v1749_v60  ;;  %3612 = vmatprep.subr.bf16.mxu0 %v3835_v22  ;;  %3642 = vmatprep.subr.bf16.mxu1 %v3835_v22 }
 0x1d9   : > { %v1759_v7 = vsel %vm738_vm9, %v1754_v62, %v1758_v63  ;;  %v1587_v42 = vld [vmem:[#allocation2 + $0x58] sm:$0xf]  ;;  %v3831_v5 = vld [vmem:[#allocation2 + $0x5c] ss:$0 sps:$4 sm:$0x11]   ;;  %3613 = vmatpush3.bf16.msra.mxu0 %v3835_v22 }
 0x1da   : > { %v3212_v59 = vcombine.low %v1586_v32, %v1587_v42  ;;  %v3228_v30 = vcombine.low %v1603_v4, %v1587_v42  ;;  %v1826_v17 = vrot.slane %v3831_v5, 1  ;;  %v1768_v12 = vshll.u32 %v3831_v5, 16  ;;  %3650 = vmatpush3.bf16.msra.mxu1 %v3835_v22  ;;  %3614 = vmatprep.subr.bf16.mxu0 %v3836_v8 }
 0x1db   : > { %2108 = vmatmul.mubr.bf16.gmra.mrb[36].mxu1 %v3210_v38  ;;  %3643 = vmatprep.subr.bf16.mxu1 %v3836_v8  ;;  %v3837_v38 = vld [vmem:[#allocation9 + $0x20] sm:$0xff]  }
 0x1dc   : > { %2115 = vmatprep.mubr.bf16.mxu1 %v1759_v7  ;;  %v1825_v6 = vrot.slane %v3228_v30, 1  ;;  %v1763_v11 = vshll.u32 %v3212_v59, 16  ;;  %v1761_v13 = vshrl.u32 %v3212_v59, 16  ;;  %v1770_v2 = vrot.slane %v1768_v12, 1 }
 0x1dd   : > { %3615 = vmatpush3.bf16.msra.mxu0 %v3836_v8 }
 0x1de   : > { %v1827_v21 = vsel %vm867_vm10, %v1825_v6, %v1826_v17  ;;  %v1765_v29 = vrot.slane %v1763_v11, 1  ;;  %3651 = vmatpush3.bf16.msra.mxu1 %v3836_v8  ;;  %3616 = vmatprep.subr.bf16.mxu0 %v3837_v38 }
 0x1df   : > { %3605 = vmatmul.mubr.bf16.gmra.mrb[44].mxu0 %v1827_v21  ;;  %3644 = vmatprep.subr.bf16.mxu1 %v3837_v38 }
 0x1e0   : > { %v1766_v15 = vor.u32 %v1765_v29, %v1761_v13 }
 0x1e1   : > { %3617 = vmatpush3.bf16.msra.mxu0 %v3837_v38 }
 0x1e2   : > { %v1771_v18 = vsel %vm738_vm9, %v1766_v15, %v1770_v2  ;;  %3652 = vmatpush3.bf16.msra.mxu1 %v3837_v38  ;;  %3618 = vmatprep.subr.bf16.mxu0 %v3838_v23 }
 0x1e3   : > { %2116 = vmatmul.mubr.bf16.gmra.mrb[40].mxu1 %v3211_v54  ;;  %3645 = vmatprep.subr.bf16.mxu1 %v3838_v23 }
 0x1e4   : > { %2123 = vmatprep.mubr.bf16.mxu1 %v1771_v18 }
 0x1e5   : > { %3619 = vmatpush3.bf16.msra.mxu0 %v3838_v23 }
 0x1e6   : > { %3653 = vmatpush3.bf16.msra.mxu1 %v3838_v23  ;;  %3620 = vmatprep.subr.bf16.mxu0 %v3839_v24 }
 0x1e7   : > { %3646 = vmatprep.subr.bf16.mxu1 %v3839_v24 }
 0x1e9   : > { %3621 = vmatpush3.bf16.msra.mxu0 %v3839_v24 }
 0x1ea   : > { %3654 = vmatpush3.bf16.msra.mxu1 %v3839_v24  ;;  %3622 = vmatprep.subr.bf16.mxu0 %v3840_v25 }
 0x1eb   : > { %2124 = vmatmul.mubr.bf16.gmra.mrb[44].mxu1 %v3212_v59  ;;  %3647 = vmatprep.subr.bf16.mxu1 %v3840_v25  ;;  %v2456_v59 = vld [vmem:[#allocation2 + $0x8] sm:$0x1] }
 0x1ed   : > { %3623 = vmatpush3.bf16.msra.mxu0 %v3840_v25 }
 0x1ee   : > { %3655 = vmatpush3.bf16.msra.mxu1 %v3840_v25 }
 0x280   : > { %v3464_v27 = vpop.f32.mrb[16].mxu1 }
 0x281   : > { %v3465_v31 = vpop.f32.mrb[17].mxu1  ;;  %v3594_v33 = vpop.f32.mrb[32].mxu0 }
 0x282   : > { %v3466_v35 = vadd.f32 %v3465_v31, %v3464_v27  ;;  %v3467_v36 = vpop.f32.mrb[18].mxu1  ;;  %v2166_v37 = vpop.f32.mrb[33].mxu0 }
 0x283   : > { %v3468_v48 = vpop.f32.mrb[19].mxu1  ;;  %v3595_v26 = vpop.f32.mrb[34].mxu0 }
 0x284   : > { %v3469_v39 = vadd.f32 %v3468_v48, %v3467_v36  ;;  %v2070_v10 = vadd.f32 %v3466_v35, %v4619_v34  ;;  %v2169_v3 = vpop.f32.mrb[35].mxu0 }
 0x286   : > { %v2167_v41 = vadd.f32 %v2166_v37, %v2070_v10  ;;  %v2073_v44 = vadd.f32 %v3469_v39, %v4619_v34  ;;  %v2459_v37 = vld [vmem:[#allocation2 + $0xc] sm:$0xf] }
 0x288   : > { %v2229_v45 = vmax.f32 %v2167_v41, 0.0  ;;  %v2170_v47 = vadd.f32 %v2169_v3, %v2073_v44 }
 0x28a   : > { %v3311_v43 = vpack.c.bf16 %v2229_v45, %v2229_v45  ;;  %v2230_v40 = vmax.f32 %v2170_v47, 0.0 }
 0x28c   : > { %v3470_v49 = vpop.f32.mrb[20].mxu1  ;;  %v2294_v53 = vshrl.u32 %v3311_v43, 16  ;;  %v3312_v50 = vpack.c.bf16 %v2230_v40, %v2230_v40  ;;  %v2297_v1 = vshll.u32 %v3311_v43, 16 }
 0x28d   : > { %v3471_v51 = vpop.f32.mrb[21].mxu1 }
 0x28e   : > { %v3472_v54 = vadd.f32 %v3471_v51, %v3470_v49  ;;  %v3473_v55 = vpop.f32.mrb[22].mxu1  ;;  %v2296_v52 = vrot.slane %v2294_v53, 7  ;;  %v2302_v56 = vshrl.u32 %v3312_v50, 16  ;;  %v2305_v58 = vshll.u32 %v3312_v50, 16  ;;  %v2463_v50 = vld [vmem:[#allocation2 + $0x14] sm:$0x1] }
 0x28f   : > { %v3474_v9 = vpop.f32.mrb[23].mxu1 }
 0x290   : > { %v2078_v0 = vadd.f32 %v3472_v54, %v4619_v34  ;;  %v3475_v28 = vadd.f32 %v3474_v9, %v3473_v55  ;;  %v2299_v60 = vor.u32 %v2297_v1, %v2296_v52  ;;  %v2304_v61 = vrot.slane %v2302_v56, 7 }
 0x291   : > { %v2300_v32 = vrot.slane %v2296_v52, 4 }
 0x292   : > { %v2175_v62 = vadd.f32 %v3594_v33, %v2078_v0  ;;  %v2081_v63 = vadd.f32 %v3475_v28, %v4619_v34  ;;  %v2453_v7 = vsel %vm4335_vm8, %v2299_v60, %v4495_v16  ;;  %v2307_v42 = vor.u32 %v2305_v58, %v2304_v61 }
 0x293   : > { %v2309_v4 = vrot.slane %v2304_v61, 4  ;;  %2454 = vst [vmem:[#allocation2] sm:$0xf] %v2453_v7 }
 0x294   : > { %v2231_v5 = vmax.f32 %v2175_v62, 0.0  ;;  %v2178_v30 = vadd.f32 %v3595_v26, %v2081_v63  ;;  %v2308_v6 = vsel %vm4327_vm7, %v2300_v32, %v2307_v42  ;;  %v3476_v11 = vpop.f32.mrb[24].mxu1 }
 0x295   : > { %v2457_v17 = vsel %vm4304_vm3, %v2309_v4, %v2456_v59  ;;  %2455 = vst [vmem:[#allocation2 + $0x4] sm:$0xf] %v2308_v6  ;;  %v3477_v13 = vpop.f32.mrb[25].mxu1 }
 0x296   : > { %2458 = vst [vmem:[#allocation2 + $0x8] sm:$0x1] %v2457_v17  ;;  %v3313_v12 = vpack.c.bf16 %v2231_v5, %v2231_v5  ;;  %v2232_v21 = vmax.f32 %v2178_v30, 0.0  ;;  %v3478_v29 = vadd.f32 %v3477_v13, %v3476_v11  ;;  %v3479_v16 = vpop.f32.mrb[26].mxu1  ;;  %v3598_v15 = vpop.f32.mrb[36].mxu0 }
 0x297   : > { %v3480_v19 = vpop.f32.mrb[27].mxu1  ;;  %v2182_v20 = vpop.f32.mrb[37].mxu0 }
 0x298   : > { %v2311_v2 = vshrl.u32 %v3313_v12, 16  ;;  %v3314_v18 = vpack.c.bf16 %v2232_v21, %v2232_v21  ;;  %v3481_v22 = vadd.f32 %v3480_v19, %v3479_v16  ;;  %v2086_v8 = vadd.f32 %v3478_v29, %v4619_v34  ;;  %v4633_v38 = vpop.f32.mrb[38].mxu0  ;;  %v2466_v19 = vld [vmem:[#allocation2 + $0x18] sm:$0xf] }
 0x299   : > { %v2314_v24 = vshll.u32 %v3313_v12, 16  ;;  %v2185_v27 = vpop.f32.mrb[39].mxu0 }
 0x29a   : > { %v2313_v23 = vrot.slane %v2311_v2, 7  ;;  %v2319_v25 = vshrl.u32 %v3314_v18, 16  ;;  %v2183_v31 = vadd.f32 %v2182_v20, %v2086_v8  ;;  %v2089_v33 = vadd.f32 %v3481_v22, %v4619_v34  ;;  %v2508_v35 = vld [vmem:[#allocation2] sm:$0xf] }
 0x29b   : > { %v2322_v26 = vshll.u32 %v3314_v18, 16  ;;  %v2536_v39 = vshrl.u32 %v2508_v35, 16  ;;  %v2539_v45 = vshll.u32 %v2508_v35, 16 }
 0x29c   : > { %v2316_v36 = vor.u32 %v2314_v24, %v2313_v23  ;;  %v2321_v48 = vrot.slane %v2319_v25, 7  ;;  %v2317_v10 = vrot.slane %v2313_v23, 4  ;;  %v2233_v3 = vmax.f32 %v2183_v31, 0.0  ;;  %v2509_v44 = vld [vmem:[#allocation2 + $0x4] sm:$0xf] }
 0x29d   : > { %v2186_v41 = vadd.f32 %v2185_v27, %v2089_v33  ;;  %v2538_v53 = vrot.slane %v2536_v39, 4  ;;  %v2541_v52 = vrot.slane %v2539_v45, 5  ;;  %v2545_v1 = vshll.u32 %v2509_v44, 16  ;;  %v2510_v63 = vld [vmem:[#allocation2 + $0x8] sm:$0x1] }
 0x29e   : > { %v2460_v47 = vsel %vm4335_vm8, %v2316_v36, %v2459_v37  ;;  %v2324_v43 = vor.u32 %v2322_v26, %v2321_v48  ;;  %v2326_v40 = vrot.slane %v2321_v48, 4  ;;  %v3482_v49 = vpop.f32.mrb[28].mxu1  ;;  %v3315_v51 = vpack.c.bf16 %v2233_v3, %v2233_v3 }
 0x29f   : > { %2461 = vst [vmem:[#allocation2 + $0xc] sm:$0xf] %v2460_v47  ;;  %v2234_v54 = vmax.f32 %v2186_v41, 0.0  ;;  %v3483_v55 = vpop.f32.mrb[29].mxu1  ;;  %v2549_v60 = vshrl.u32 %v2509_v44, 16  ;;  %v2542_v32 = vor.u32 %v2541_v52, %v2538_v53  ;;  %v2547_v4 = vrot.slane %v2545_v1, 5 }
 0x2a0   : > { %v2325_v56 = vsel %vm4327_vm7, %v2317_v10, %v2324_v43  ;;  %v2464_v9 = vsel %vm4304_vm3, %v2326_v40, %v2463_v50  ;;  %v3484_v0 = vadd.f32 %v3483_v55, %v3482_v49  ;;  %v3485_v28 = vpop.f32.mrb[30].mxu1  ;;  %v2328_v61 = vshrl.u32 %v3315_v51, 16  ;;  %v2470_v10 = vld [vmem:[#allocation2 + $0x20] sm:$0x1] }
 0x2a1   : > { %2462 = vst [vmem:[#allocation2 + $0x10] sm:$0xf] %v2325_v56  ;;  %2465 = vst [vmem:[#allocation2 + $0x14] sm:$0x1] %v2464_v9  ;;  %v3316_v58 = vpack.c.bf16 %v2234_v54, %v2234_v54  ;;  %v3486_v62 = vpop.f32.mrb[31].mxu1  ;;  %v2551_v59 = vrot.slane %v2549_v60, 4 }
 0x2a2   : > { %v2094_v7 = vadd.f32 %v3484_v0, %v4619_v34  ;;  %v3487_v42 = vadd.f32 %v3486_v62, %v3485_v28  ;;  %v2330_v5 = vrot.slane %v2328_v61, 7  ;;  %v2331_v30 = vshll.u32 %v3315_v51, 16 }
 0x2a3   : > { %v2336_v6 = vshrl.u32 %v3316_v58, 16  ;;  %v2543_v17 = vrot.slane %v2542_v32, 4  ;;  %v4644_v21 = vpop.f32.mrb[40].mxu0  ;;  %v2552_v29 = vor.u32 %v2551_v59, %v2547_v4  ;;  %v2555_v16 = vshll.u32 %v2510_v63, 16 }
 0x2a4   : > { %v2191_v11 = vadd.f32 %v3598_v15, %v2094_v7  ;;  %v2097_v12 = vadd.f32 %v3487_v42, %v4619_v34  ;;  %v2333_v2 = vor.u32 %v2331_v30, %v2330_v5  ;;  %v2334_v18 = vrot.slane %v2330_v5, 4  ;;  %v2198_v8 = vpop.f32.mrb[41].mxu0 }
 0x2a5   : > { %v2338_v20 = vrot.slane %v2336_v6, 7  ;;  %v2339_v22 = vshll.u32 %v3316_v58, 16  ;;  %v4652_v25 = vpop.f32.mrb[42].mxu0  ;;  %v2553_v27 = vrot.slane %v2552_v29, 4  ;;  %v2557_v31 = vrot.slane %v2555_v16, 5 }
 0x2a6   : > { %v2235_v23 = vmax.f32 %v2191_v11, 0.0  ;;  %v2194_v15 = vadd.f32 %v4633_v38, %v2097_v12  ;;  %v3488_v24 = vpop.f32.mrb[32].mxu1  ;;  %v2467_v33 = vsel %vm4335_vm8, %v2333_v2, %v2466_v19  ;;  %v2201_v48 = vpop.f32.mrb[43].mxu0  ;;  %v2548_v26 = vsel %vm4647_vm13, %v2543_v17, %v2547_v4  ;;  %v2511_v39 = vld [vmem:[#allocation2 + $0xc] sm:$0xf] }
 0x2a7   : > { %v2341_v35 = vor.u32 %v2339_v22, %v2338_v20  ;;  %v2343_v36 = vrot.slane %v2338_v20, 4  ;;  %v3489_v37 = vpop.f32.mrb[33].mxu1  ;;  %2468 = vst [vmem:[#allocation2 + $0x18] sm:$0xf] %v2467_v33  ;;  %v2558_v45 = vsel %vm4647_vm13, %v2553_v27, %v2557_v31  ;;  %v2560_v50 = vshrl.u32 %v2511_v39, 16 }
 0x2a8   : > { %v3317_v3 = vpack.c.bf16 %v2235_v23, %v2235_v23  ;;  %v2236_v38 = vmax.f32 %v2194_v15, 0.0  ;;  %v3490_v41 = vadd.f32 %v3489_v37, %v3488_v24  ;;  %v3491_v44 = vpop.f32.mrb[34].mxu1  ;;  %v2512_v47 = vld [vmem:[#allocation2 + $0x10] sm:$0xf]  ;;  %v3271_v53 = vcombine.low %v2548_v26, %v2558_v45  ;;  %v2513_v62 = vld [vmem:[#allocation2 + $0x14] sm:$0x1] }
 0x2a9   : > { %v2342_v43 = vsel %vm4327_vm7, %v2334_v18, %v2341_v35  ;;  %v2471_v40 = vsel %vm4304_vm3, %v2343_v36, %v2470_v10  ;;  %v3492_v49 = vpop.f32.mrb[35].mxu1  ;;  %v2562_v56 = vrot.slane %v2560_v50, 4  ;;  %v2563_v9 = vshll.u32 %v2511_v39, 16  ;;  %v2473_v17 = vld [vmem:[#allocation2 + $0x24] sm:$0xf] }
 0x2aa   : > { %2469 = vst [vmem:[#allocation2 + $0x1c] sm:$0xf] %v2342_v43  ;;  %2472 = vst [vmem:[#allocation2 + $0x20] sm:$0x1] %v2471_v40  ;;  %v2345_v51 = vshrl.u32 %v3317_v3, 16  ;;  %v2348_v54 = vshll.u32 %v3317_v3, 16  ;;  %v3318_v55 = vpack.c.bf16 %v2236_v38, %v2236_v38  ;;  %v3493_v52 = vadd.f32 %v3492_v49, %v3491_v44  ;;  %3624 = vmatprep.mubr.bf16.mxu0 %v3271_v53 }
 0x2ab   : > { %v2102_v1 = vadd.f32 %v3490_v41, %v4619_v34  ;;  %v2569_v0 = vshll.u32 %v2512_v47, 16  ;;  %v2565_v32 = vrot.slane %v2563_v9, 5  ;;  %v2573_v42 = vshrl.u32 %v2512_v47, 16  ;;  %v2477_v23 = vld [vmem:[#allocation2 + $0x2c] sm:$0x1] }
 0x2ac   : > { %v2347_v28 = vrot.slane %v2345_v51, 7  ;;  %v2353_v60 = vshrl.u32 %v3318_v55, 16  ;;  %v2356_v61 = vshll.u32 %v3318_v55, 16  ;;  %v2105_v58 = vadd.f32 %v3493_v52, %v4619_v34 }
 0x2ad   : > { %v2199_v63 = vadd.f32 %v2198_v8, %v2102_v1  ;;  %v4666_v7 = vrot.slane %v2569_v0, 5  ;;  %v2566_v29 = vor.u32 %v2565_v32, %v2562_v56  ;;  %v2575_v16 = vrot.slane %v2573_v42, 4  ;;  %v2480_v32 = vld [vmem:[#allocation2 + $0x30] sm:$0xf] }
 0x2ae   : > { %v2350_v4 = vor.u32 %v2348_v54, %v2347_v28  ;;  %v2351_v59 = vrot.slane %v2347_v28, 4  ;;  %v2355_v5 = vrot.slane %v2353_v60, 7  ;;  %v2202_v30 = vadd.f32 %v2201_v48, %v2105_v58  ;;  %v3494_v6 = vpop.f32.mrb[36].mxu1  ;;  %v2514_v39 = vld [vmem:[#allocation2 + $0x18] sm:$0xf] }
 0x2af   : > { %v2237_v11 = vmax.f32 %v2199_v63, 0.0  ;;  %v3495_v12 = vpop.f32.mrb[37].mxu1  ;;  %v2579_v2 = vshll.u32 %v2513_v62, 16  ;;  %v2567_v31 = vrot.slane %v2566_v29, 4  ;;  %v2576_v33 = vor.u32 %v2575_v16, %v4666_v7 }
 0x2b0   : > { %v2474_v18 = vsel %vm4335_vm8, %v2350_v4, %v2473_v17  ;;  %v2358_v19 = vor.u32 %v2356_v61, %v2355_v5  ;;  %v2360_v20 = vrot.slane %v2355_v5, 4  ;;  %v2238_v22 = vmax.f32 %v2202_v30, 0.0  ;;  %v3497_v8 = vpop.f32.mrb[38].mxu1  ;;  %v2484_v5 = vld [vmem:[#allocation2 + $0x38] sm:$0x1] }
 0x2b1   : > { %2475 = vst [vmem:[#allocation2 + $0x24] sm:$0xf] %v2474_v18  ;;  %v3319_v15 = vpack.c.bf16 %v2237_v11, %v2237_v11  ;;  %v3496_v24 = vadd.f32 %v3495_v12, %v3494_v6  ;;  %v3498_v27 = vpop.f32.mrb[39].mxu1  ;;  %v2572_v41 = vsel %vm4647_vm13, %v2567_v31, %v4666_v7  ;;  %v4681_v45 = vld [vmem:[#allocation2 + $0x1c] sm:$0xf]  ;;  %v2577_v49 = vrot.slane %v2576_v33, 4 }
 0x2b2   : > { %v2359_v35 = vsel %vm4327_vm7, %v2351_v59, %v2358_v19  ;;  %v2478_v36 = vsel %vm4304_vm3, %v2360_v20, %v2477_v23  ;;  %v3320_v37 = vpack.c.bf16 %v2238_v22, %v2238_v22  ;;  %v3499_v48 = vadd.f32 %v3498_v27, %v3497_v8  ;;  %v4675_v26 = vpop.f32.mrb[44].mxu0  ;;  %v2516_v18 = vld [vmem:[#allocation2 + $0x20] sm:$0x1] }
 0x2b3   : > { %2476 = vst [vmem:[#allocation2 + $0x28] sm:$0xf] %v2359_v35  ;;  %2479 = vst [vmem:[#allocation2 + $0x2c] sm:$0x1] %v2478_v36  ;;  %v2362_v10 = vshrl.u32 %v3319_v15, 16  ;;  %v2365_v3 = vshll.u32 %v3319_v15, 16  ;;  %v2110_v38 = vadd.f32 %v3496_v24, %v4619_v34 }
 0x2b4   : > { %v2214_v44 = vpop.f32.mrb[45].mxu0  ;;  %v2370_v47 = vshrl.u32 %v3320_v37, 16  ;;  %v2373_v43 = vshll.u32 %v3320_v37, 16  ;;  %v2113_v40 = vadd.f32 %v3499_v48, %v4619_v34  ;;  %v2581_v54 = vrot.slane %v2579_v2, 5 }
 0x2b5   : > { %v4684_v53 = vpop.f32.mrb[46].mxu0  ;;  %v2364_v50 = vrot.slane %v2362_v10, 7  ;;  %v2207_v51 = vadd.f32 %v4644_v21, %v2110_v38  ;;  %v2584_v52 = vshrl.u32 %v2514_v39, 16  ;;  %v2587_v0 = vshll.u32 %v2514_v39, 16 }
 0x2b6   : > { %v2217_v55 = vpop.f32.mrb[47].mxu0  ;;  %v2372_v1 = vrot.slane %v2370_v47, 7  ;;  %v2210_v56 = vadd.f32 %v4652_v25, %v2113_v40  ;;  %v3500_v9 = vpop.f32.mrb[40].mxu1  ;;  %v2593_v28 = vshll.u32 %v4681_v45, 16  ;;  %v2582_v62 = vsel %vm4647_vm13, %v2577_v49, %v2581_v54 }
 0x2b7   : > { %v2367_v60 = vor.u32 %v2365_v3, %v2364_v50  ;;  %v2368_v61 = vrot.slane %v2364_v50, 4  ;;  %v2239_v58 = vmax.f32 %v2207_v51, 0.0  ;;  %v3501_v63 = vpop.f32.mrb[41].mxu1  ;;  %v3272_v4 = vcombine.low %v2572_v41, %v2582_v62  ;;  %v2487_v50 = vld [vmem:[#allocation2 + $0x3c] sm:$0xf] }
 0x2b8   : > { %v2375_v7 = vor.u32 %v2373_v43, %v2372_v1  ;;  %v2377_v21 = vrot.slane %v2372_v1, 4  ;;  %v2240_v42 = vmax.f32 %v2210_v56, 0.0  ;;  %v3503_v59 = vpop.f32.mrb[42].mxu1  ;;  %v3502_v6 = vadd.f32 %v3501_v63, %v3500_v9  ;;  %v4698_v23 = vld [vmem:[#allocation2 + $0x24] sm:$0xf] }
 0x2b9   : > { %v2481_v25 = vsel %vm4335_vm8, %v2367_v60, %v2480_v32  ;;  %v3321_v30 = vpack.c.bf16 %v2239_v58, %v2239_v58  ;;  %v3504_v17 = vpop.f32.mrb[43].mxu1  ;;  %v2586_v11 = vrot.slane %v2584_v52, 4  ;;  %3625 = vmatmul.mubr.bf16.vlgmr.msra.gmra.mrb[48].mxu0 %v3272_v4  ;;  %v2589_v8 = vrot.slane %v2587_v0, 5  ;;  %v2491_v56 = vld [vmem:[#allocation2 + $0x44] sm:$0x1] }
 0x2ba   : > { %2482 = vst [vmem:[#allocation2 + $0x30] sm:$0xf] %v2481_v25  ;;  %v2376_v12 = vsel %vm4327_vm7, %v2368_v61, %v2375_v7  ;;  %v2485_v29 = vsel %vm4304_vm3, %v2377_v21, %v2484_v5  ;;  %v3322_v16 = vpack.c.bf16 %v2240_v42, %v2240_v42  ;;  %v3505_v2 = vadd.f32 %v3504_v17, %v3503_v59  ;;  %v2518_v42 = vld [vmem:[#allocation2 + $0x28] sm:$0xf] }
 0x2bb   : > { %2483 = vst [vmem:[#allocation2 + $0x34] sm:$0xf] %v2376_v12  ;;  %2486 = vst [vmem:[#allocation2 + $0x38] sm:$0x1] %v2485_v29  ;;  %v2379_v19 = vshrl.u32 %v3321_v30, 16  ;;  %v2382_v20 = vshll.u32 %v3321_v30, 16  ;;  %v2118_v22 = vadd.f32 %v3502_v6, %v4619_v34  ;;  %v2590_v36 = vor.u32 %v2589_v8, %v2586_v11 }
 0x2bc   : > { %v2387_v15 = vshrl.u32 %v3322_v16, 16  ;;  %v2390_v24 = vshll.u32 %v3322_v16, 16  ;;  %v2121_v27 = vadd.f32 %v3505_v2, %v4619_v34  ;;  %v2595_v31 = vrot.slane %v2593_v28, 5 }
 0x2bd   : > { %v2381_v33 = vrot.slane %v2379_v19, 7  ;;  %v2215_v35 = vadd.f32 %v2214_v44, %v2118_v22  ;;  %v2597_v37 = vshrl.u32 %v4681_v45, 16  ;;  %v2603_v3 = vshll.u32 %v2516_v18, 16  ;;  %v2498_v22 = vld [vmem:[#allocation2 + $0x50] sm:$0x1] }
 0x2be   : > { %v2389_v48 = vrot.slane %v2387_v15, 7  ;;  %v2218_v39 = vadd.f32 %v2217_v55, %v2121_v27  ;;  %v3506_v10 = vpop.f32.mrb[44].mxu1  ;;  %v2608_v38 = vshrl.u32 %v4698_v23, 16  ;;  %v2591_v40 = vrot.slane %v2590_v36, 4 }
 0x2bf   : > { %v2384_v41 = vor.u32 %v2382_v20, %v2381_v33  ;;  %v2385_v47 = vrot.slane %v2381_v33, 4  ;;  %v2241_v43 = vmax.f32 %v2215_v35, 0.0  ;;  %v3507_v49 = vpop.f32.mrb[45].mxu1  ;;  %v2599_v1 = vrot.slane %v2597_v37, 4  ;;  %v2494_v20 = vld [vmem:[#allocation2 + $0x48] sm:$0xf] }
 0x2c0   : > { %v2392_v51 = vor.u32 %v2390_v24, %v2389_v48  ;;  %v2394_v54 = vrot.slane %v2389_v48, 4  ;;  %v2242_v52 = vmax.f32 %v2218_v39, 0.0  ;;  %v3509_v44 = vpop.f32.mrb[46].mxu1  ;;  %v2596_v9 = vsel %vm4647_vm13, %v2591_v40, %v2595_v31 }
 0x2c1   : > { %v2488_v45 = vsel %vm4335_vm8, %v2384_v41, %v2487_v50  ;;  %v3323_v55 = vpack.c.bf16 %v2241_v43, %v2241_v43  ;;  %v2605_v0 = vrot.slane %v2603_v3, 5  ;;  %v3510_v28 = vpop.f32.mrb[47].mxu1  ;;  %v2600_v62 = vor.u32 %v2599_v1, %v2595_v31 }
 0x2c2   : > { %2489 = vst [vmem:[#allocation2 + $0x3c] sm:$0xf] %v2488_v45  ;;  %v2393_v60 = vsel %vm4327_vm7, %v2385_v47, %v2392_v51  ;;  %v2492_v61 = vsel %vm4304_vm3, %v2394_v54, %v2491_v56  ;;  %v3324_v58 = vpack.c.bf16 %v2242_v52, %v2242_v52  ;;  %v3508_v7 = vadd.f32 %v3507_v49, %v3506_v10  ;;  %v2521_v39 = vld [vmem:[#allocation2 + $0x34] sm:$0xf] }
 0x2c3   : > { %2490 = vst [vmem:[#allocation2 + $0x40] sm:$0xf] %v2393_v60  ;;  %2493 = vst [vmem:[#allocation2 + $0x44] sm:$0x1] %v2492_v61  ;;  %v2396_v63 = vshrl.u32 %v3323_v55, 16  ;;  %v2399_v32 = vshll.u32 %v3323_v55, 16  ;;  %v3511_v21 = vadd.f32 %v3510_v28, %v3509_v44 }
 0x2c4   : > { %v2404_v4 = vshrl.u32 %v3324_v58, 16  ;;  %v2407_v59 = vshll.u32 %v3324_v58, 16  ;;  %v2601_v25 = vrot.slane %v2600_v62, 4  ;;  %v2610_v5 = vrot.slane %v2608_v38, 4  ;;  %v2522_v44 = vld [vmem:[#allocation2 + $0x38] sm:$0x1] }
 0x2c5   : > { %v2398_v30 = vrot.slane %v2396_v63, 7  ;;  %v2126_v6 = vadd.f32 %v3508_v7, %v4619_v34  ;;  %v2129_v17 = vadd.f32 %v3511_v21, %v4619_v34  ;;  %v2611_v11 = vshll.u32 %v4698_v23, 16  ;;  %v2519_v34 = vld [vmem:[#allocation2 + $0x2c] sm:$0x1]  ;;  %v2520_v23 = vld [vmem:[#allocation2 + $0x30] sm:$0xf] }
 0x2c6   : > { %v2406_v12 = vrot.slane %v2404_v4, 7  ;;  %v2606_v29 = vsel %vm4647_vm13, %v2601_v25, %v2605_v0  ;;  %v2617_v16 = vshll.u32 %v2518_v42, 16  ;;  %v2621_v2 = vshrl.u32 %v2518_v42, 16  ;;  %v2501_v42 = vld [vmem:[#allocation2 + $0x54] sm:$0xf] }
 0x2c7   : > { %v2401_v18 = vor.u32 %v2399_v32, %v2398_v30  ;;  %v2402_v19 = vrot.slane %v2398_v30, 4  ;;  %v3273_v8 = vcombine.low %v2596_v9, %v2606_v29  ;;  %v2223_v15 = vadd.f32 %v4675_v26, %v2126_v6 }
 0x2c8   : > { %v2409_v24 = vor.u32 %v2407_v59, %v2406_v12  ;;  %v2411_v27 = vrot.slane %v2406_v12, 4  ;;  %v2226_v31 = vadd.f32 %v4684_v53, %v2129_v17  ;;  %v2613_v33 = vrot.slane %v2611_v11, 5  ;;  %v2505_v11 = vld [vmem:[#allocation2 + $0x5c] sm:$0x1] }
 0x2c9   : > { %v2495_v35 = vsel %vm4335_vm8, %v2401_v18, %v2494_v20  ;;  %3628 = vmatprep.mubr.bf16.mxu0 %v3273_v8  ;;  %v2243_v36 = vmax.f32 %v2223_v15, 0.0  ;;  %v2619_v37 = vrot.slane %v2617_v16, 5  ;;  %v2623_v48 = vrot.slane %v2621_v2, 4  ;;  %v2523_v0 = vld [vmem:[#allocation2 + $0x3c] sm:$0xf] }
 0x2ca   : > { %2496 = vst [vmem:[#allocation2 + $0x48] sm:$0xf] %v2495_v35  ;;  %v2410_v10 = vsel %vm4327_vm7, %v2402_v19, %v2409_v24  ;;  %v2499_v26 = vsel %vm4304_vm3, %v2411_v27, %v2498_v22  ;;  %v2244_v3 = vmax.f32 %v2226_v31, 0.0  ;;  %v2614_v53 = vor.u32 %v2613_v33, %v2610_v5  ;;  %v2524_v25 = vld [vmem:[#allocation2 + $0x40] sm:$0xf] }
 0x2cb   : > { %2497 = vst [vmem:[#allocation2 + $0x4c] sm:$0xf] %v2410_v10  ;;  %2500 = vst [vmem:[#allocation2 + $0x50] sm:$0x1] %v2499_v26  ;;  %v3325_v38 = vpack.c.bf16 %v2243_v36, %v2243_v36  ;;  %v2624_v41 = vor.u32 %v2623_v48, %v2619_v37  ;;  %v2627_v47 = vshll.u32 %v2519_v34, 16  ;;  %v2632_v43 = vshrl.u32 %v2520_v23, 16 }
 0x2cc   : > { %v3326_v40 = vpack.c.bf16 %v2244_v3, %v2244_v3  ;;  %v2615_v49 = vrot.slane %v2614_v53, 4  ;;  %v2635_v50 = vshll.u32 %v2520_v23, 16  ;;  %v2641_v51 = vshll.u32 %v2521_v39, 16  ;;  %v2525_v15 = vld [vmem:[#allocation2 + $0x44] sm:$0x1] }
 0x2cd   : > { %v2413_v54 = vshrl.u32 %v3325_v38, 16  ;;  %v2625_v52 = vrot.slane %v2624_v41, 4  ;;  %v2629_v1 = vrot.slane %v2627_v47, 5  ;;  %v2416_v45 = vshll.u32 %v3325_v38, 16 }
 0x2ce   : > { %v2421_v56 = vshrl.u32 %v3326_v40, 16  ;;  %v2424_v55 = vshll.u32 %v3326_v40, 16  ;;  %v2634_v9 = vrot.slane %v2632_v43, 4  ;;  %v2620_v60 = vsel %vm4647_vm13, %v2615_v49, %v2619_v37 }
 0x2cf   : > { %v2415_v28 = vrot.slane %v2413_v54, 7  ;;  %v2630_v61 = vsel %vm4647_vm13, %v2625_v52, %v2629_v1  ;;  %v2637_v58 = vrot.slane %v2635_v50, 5  ;;  %v2643_v32 = vrot.slane %v2641_v51, 5 }
 0x2d0   : > { %v2423_v62 = vrot.slane %v2421_v56, 7  ;;  %v3274_v63 = vcombine.low %v2620_v60, %v2630_v61  ;;  %v2645_v7 = vshrl.u32 %v2521_v39, 16  ;;  %v2651_v59 = vshll.u32 %v2522_v44, 16 }
 0x2d1   : > { %v2418_v21 = vor.u32 %v2416_v45, %v2415_v28  ;;  %v2638_v4 = vor.u32 %v2637_v58, %v2634_v9  ;;  %v2656_v5 = vshrl.u32 %v2523_v0, 16  ;;  %v2419_v30 = vrot.slane %v2415_v28, 4  ;;  %v2526_v19 = vld [vmem:[#allocation2 + $0x48] sm:$0xf] }
 0x2d2   : > { %v2426_v6 = vor.u32 %v2424_v55, %v2423_v62  ;;  %v2428_v17 = vrot.slane %v2423_v62, 4  ;;  %3629 = vmatmul.mubr.bf16.gmra.mrb[52].mxu0 %v3274_v63  ;;  %v2647_v12 = vrot.slane %v2645_v7, 4  ;;  %v2659_v18 = vshll.u32 %v2523_v0, 16  ;;  %v2527_v27 = vld [vmem:[#allocation2 + $0x4c] sm:$0xf] }
 0x2d3   : > { %v2502_v29 = vsel %vm4335_vm8, %v2418_v21, %v2501_v42  ;;  %v2639_v16 = vrot.slane %v2638_v4, 4  ;;  %v2658_v2 = vrot.slane %v2656_v5, 4  ;;  %v2665_v24 = vshll.u32 %v2524_v25, 16  ;;  %v2528_v39 = vld [vmem:[#allocation2 + $0x50] sm:$0x1] }
 0x2d4   : > { %2503 = vst [vmem:[#allocation2 + $0x54] sm:$0xf] %v2502_v29  ;;  %v2427_v20 = vsel %vm4327_vm7, %v2419_v30, %v2426_v6  ;;  %v2506_v22 = vsel %vm4304_vm3, %v2428_v17, %v2505_v11  ;;  %v2648_v8 = vor.u32 %v2647_v12, %v2643_v32  ;;  %v2653_v31 = vrot.slane %v2651_v59, 5 }
 0x2d5   : > { %2504 = vst [vmem:[#allocation2 + $0x58] sm:$0xf] %v2427_v20  ;;  %2507 = vst [vmem:[#allocation2 + $0x5c] sm:$0x1] %v2506_v22  ;;  %v2644_v57 = vsel %vm4647_vm13, %v2639_v16, %v2643_v32  ;;  %v2661_v34 = vrot.slane %v2659_v18, 5  ;;  %v2669_v33 = vshrl.u32 %v2524_v25, 16 }
 0x2d6   : > { %v2649_v23 = vrot.slane %v2648_v8, 4  ;;  %v2667_v35 = vrot.slane %v2665_v24, 5  ;;  %v2680_v36 = vshrl.u32 %v2526_v19, 16  ;;  %v2683_v46 = vshll.u32 %v2526_v19, 16  ;;  %v3361_v19 = vld [vmem:[%s4289_s20 + $0x8] sm:$0xff]   ;;  %v3330_v20 = vld [vmem:[%s4289_s20] sm:$0xff]  }
 0x2d7   : > { %v2662_v37 = vor.u32 %v2661_v34, %v2658_v2  ;;  %v2671_v48 = vrot.slane %v2669_v33, 4  ;;  %v2675_v14 = vshll.u32 %v2525_v15, 16  ;;  %v2689_v10 = vshll.u32 %v2527_v27, 16  ;;  %v4755_v22 = vld [vmem:[%s4855_s6] ss:$0 sm:$0xff] }
 0x2d8   : > { %v2654_v26 = vsel %vm4647_vm13, %v2649_v23, %v2653_v31  ;;  %v2682_v3 = vrot.slane %v2680_v36, 4  ;;  %v2685_v53 = vrot.slane %v2683_v46, 5  ;;  %v2693_v38 = vshrl.u32 %v2527_v27, 16 }
 0x2d9   : > { %v3275_v41 = vcombine.low %v2644_v57, %v2654_v26  ;;  %v2663_v47 = vrot.slane %v2662_v37, 4  ;;  %v2672_v43 = vor.u32 %v2671_v48, %v2667_v35  ;;  %v2691_v40 = vrot.slane %v2689_v10, 5 }
 0x2da   : > { %v2686_v49 = vor.u32 %v2685_v53, %v2682_v3  ;;  %v2695_v50 = vrot.slane %v2693_v38, 4  ;;  %v2699_v51 = vshll.u32 %v2528_v39, 16  ;;  %v2677_v52 = vrot.slane %v2675_v14, 5  ;;  %v3363_v53 = vld [vmem:[%s4289_s20 + $0x18] sm:$0xff]   ;;  %v3362_v38 = vld [vmem:[%s4289_s20 + $0x10] sm:$0xff]  }
 0x2db   : > { %3632 = vmatprep.mubr.bf16.mxu1 %v3275_v41  ;;  %v2673_v54 = vrot.slane %v2672_v43, 4  ;;  %v2529_v1 = vld [vmem:[#allocation2 + $0x54] sm:$0xf]  ;;  %v2668_v44 = vsel %vm4647_vm13, %v2663_v47, %v2667_v35  ;;  %v3335_v8 = vunpack.c.l.bf16 %v3361_v19  ;;  %v3331_v24 = vunpack.c.l.bf16 %v3330_v20 }
 0x2dc   : > { %v2687_v45 = vrot.slane %v2686_v49, 4  ;;  %v2696_v56 = vor.u32 %v2695_v50, %v2691_v40  ;;  %v2530_v55 = vld [vmem:[#allocation2 + $0x58] sm:$0xf]  ;;  %v2531_v0 = vld [vmem:[#allocation2 + $0x5c] sm:$0x1]  ;;  %v2704_v28 = vshrl.u32 %v2529_v1, 16  ;;  %v3336_v31 = vunpack.c.h.bf16 %v3361_v19 }
 0x2dd   : > { %v2678_v9 = vsel %vm4647_vm13, %v2673_v54, %v2677_v52  ;;  %v2707_v60 = vshll.u32 %v2529_v1, 16  ;;  %v2713_v61 = vshll.u32 %v2530_v55, 16  ;;  %v2701_v63 = vrot.slane %v2699_v51, 5 }
 0x2de   : > { %v3276_v58 = vcombine.low %v2668_v44, %v2678_v9  ;;  %v2697_v62 = vrot.slane %v2696_v56, 4  ;;  %v2717_v32 = vshrl.u32 %v2530_v55, 16  ;;  %v2706_v7 = vrot.slane %v2704_v28, 4 }
 0x2df   : > { %v2709_v21 = vrot.slane %v2707_v60, 5  ;;  %v2715_v42 = vrot.slane %v2713_v61, 5  ;;  %v2692_v4 = vsel %vm4647_vm13, %v2687_v45, %v2691_v40  ;;  %v2723_v5 = vshll.u32 %v2531_v0, 16 }
 0x2e0   : > { %3633 = vmatmul.mubr.bf16.vlgmr.msra.gmra.mrb[48].mxu1 %v3276_v58  ;;  %v2702_v59 = vsel %vm4647_vm13, %v2697_v62, %v2701_v63  ;;  %v2719_v25 = vrot.slane %v2717_v32, 4  ;;  %v3332_v33 = vunpack.c.h.bf16 %v3330_v20  ;;  %v3343_v41 = vunpack.c.l.bf16 %v3363_v53  ;;  %v3365_v62 = vld [vmem:[%s4289_s20 + $0x28] sm:$0xff]   ;;  %v3364_v63 = vld [vmem:[%s4289_s20 + $0x20] sm:$0xff]  }
 0x2e1   : > { %v3277_v30 = vcombine.low %v2692_v4, %v2702_v59  ;;  %v2710_v6 = vor.u32 %v2709_v21, %v2706_v7  ;;  %v2725_v29 = vrot.slane %v2723_v5, 5  ;;  %v3339_v43 = vunpack.c.l.bf16 %v3362_v38 }
 0x2e2   : > { %v2720_v17 = vor.u32 %v2719_v25, %v2715_v42  ;;  %v3344_v50 = vunpack.c.h.bf16 %v3363_v53  ;;  %v3340_v52 = vunpack.c.h.bf16 %v3362_v38  ;;  %v3351_v32 = vunpack.c.l.bf16 %v3365_v62 }
 0x2e3   : > { %3636 = vmatprep.mubr.bf16.mxu1 %v3277_v30  ;;  %v2711_v11 = vrot.slane %v2710_v6, 4  ;;  %v3347_v21 = vunpack.c.l.bf16 %v3364_v63  ;;  %v3352_v59 = vunpack.c.h.bf16 %v3365_v62  ;;  %v3348_v30 = vunpack.c.h.bf16 %v3364_v63 }
 0x2e4   : > { %v2721_v12 = vrot.slane %v2720_v17, 4 }
 0x2e5   : > { %v2716_v16 = vsel %vm4647_vm13, %v2711_v11, %v2715_v42 }
 0x2e6   : > { %v2726_v2 = vsel %vm4647_vm13, %v2721_v12, %v2725_v29 }
 0x2e7   : > { %v3278_v18 = vcombine.low %v2716_v16, %v2726_v2 }
 0x2e9   : > { %3637 = vmatmul.mubr.bf16.gmra.mrb[52].mxu1 %v3278_v18  ;;  %v3367_v18 = vld [vmem:[%s4289_s20 + $0x38] sm:$0xff]  }
 0x38c   : > { %v3626_v15 = vpop.f32.mrb[48].mxu0 }
 0x38d   : > { %v2873_v27 = vadd.f32 %v3626_v15, %v4755_v22  ;;  %v2864_v57 = vpop.f32.mrb[49].mxu0 }
 0x38e   : > { %v2865_v13 = vadd.f32 %v4755_v22, %v2864_v57  ;;  %v3627_v34 = vpop.f32.mrb[50].mxu0 }
 0x38f   : > { %v2961_v23 = vadd.f32 %v3335_v8, %v2873_v27  ;;  %v2876_v35 = vadd.f32 %v3627_v34, %v4755_v22  ;;  %v2867_v36 = vpop.f32.mrb[51].mxu0  ;;  %v3366_v8 = vld [vmem:[%s4289_s20 + $0x30] sm:$0xff]   ;;  %v3359_v27 = vunpack.c.l.bf16 %v3367_v18  ;;  %s3955_s20 = scalar_lea.vmem %s4802_s16, 2048 }
 0x390   : > { %v2959_v46 = vadd.f32 %v3331_v24, %v2865_v13  ;;  %v2868_v37 = vadd.f32 %v4755_v22, %v2867_v36  ;;  %v3356_v36 = vunpack.c.h.bf16 %v3366_v8  ;;  %p3956_p10 = scmp.ne.s32.totalorder %s4802_s16, %s3955_s20  ;;  %p3963_p1 = scmp.lt.s32.totalorder %s3961_s13, %s3955_s20 }
 0x391   : > { %v2977_v48 = vmax.f32 %v2961_v23, 0.0  ;;  %v2962_v14 = vadd.f32 %v3336_v31, %v2876_v35  ;;  %v3355_v31 = vunpack.c.l.bf16 %v3366_v8 }
 0x392   : > { %v2975_v39 = vmax.f32 %v2959_v46, 0.0  ;;  %v2960_v10 = vadd.f32 %v3332_v33, %v2868_v37  ;;  %v3360_v33 = vunpack.c.h.bf16 %v3367_v18  ;;  %p3957_p3 = pnand %p3956_p10, %p4234_p5  ;;  %p3964_p2 = por %p3963_p1, %p3962_p12 }
 0x393   : > { %2993 = vst [vmem:[%s4762_s12 + $0x10] sm:$0xff] %v2977_v48  ;;  %v2978_v26 = vmax.f32 %v2962_v14, 0.0 }
 0x394   : > { %2991 = vst [vmem:[%s4762_s12] sm:$0xff] %v2975_v39  ;;  %v2976_v3 = vmax.f32 %v2960_v10, 0.0  ;;  %p3958_p7 = pneg %p3957_p3 }
 0x395   : > { %2994 = vst [vmem:[%s4762_s12 + $0x18] sm:$0xff] %v2978_v26 }
 0x396   : > { %2992 = vst [vmem:[%s4762_s12 + $0x8] sm:$0xff] %v2976_v3  ;;  %p3965_p4 = pnand %p3964_p2, %p3958_p7 }
 0x3a5   : > { %v3630_v47 = vpop.f32.mrb[52].mxu0 }
 0x3a6   : > { %v2889_v40 = vadd.f32 %v3630_v47, %v4755_v22  ;;  %v2880_v49 = vpop.f32.mrb[53].mxu0 }
 0x3a7   : > { %v2881_v51 = vadd.f32 %v4755_v22, %v2880_v49  ;;  %v3631_v54 = vpop.f32.mrb[54].mxu0 }
 0x3a8   : > { %v2965_v1 = vadd.f32 %v3343_v41, %v2889_v40  ;;  %v2892_v44 = vadd.f32 %v3631_v54, %v4755_v22  ;;  %v2883_v45 = vpop.f32.mrb[55].mxu0 }
 0x3a9   : > { %v2963_v56 = vadd.f32 %v3339_v43, %v2881_v51  ;;  %v2884_v55 = vadd.f32 %v4755_v22, %v2883_v45 }
 0x3aa   : > { %v2981_v9 = vmax.f32 %v2965_v1, 0.0  ;;  %v2966_v0 = vadd.f32 %v3344_v50, %v2892_v44 }
 0x3ab   : > { %v2979_v28 = vmax.f32 %v2963_v56, 0.0  ;;  %v2964_v60 = vadd.f32 %v3340_v52, %v2884_v55 }
 0x3ac   : > { %2997 = vst [vmem:[%s4762_s12 + $0x30] sm:$0xff] %v2981_v9  ;;  %v2982_v61 = vmax.f32 %v2966_v0, 0.0 }
 0x3ad   : > { %2995 = vst [vmem:[%s4762_s12 + $0x20] sm:$0xff] %v2979_v28  ;;  %v2980_v58 = vmax.f32 %v2964_v60, 0.0 }
 0x3ae   : > { %2998 = vst [vmem:[%s4762_s12 + $0x38] sm:$0xff] %v2982_v61 }
 0x3af   : > { %2996 = vst [vmem:[%s4762_s12 + $0x28] sm:$0xff] %v2980_v58 }
 0x3b3   : > { %v3634_v7 = vpop.f32.mrb[48].mxu1 }
 0x3b4   : > { %v2905_v42 = vadd.f32 %v3634_v7, %v4755_v22  ;;  %v2896_v4 = vpop.f32.mrb[49].mxu1 }
 0x3b5   : > { %v2897_v25 = vadd.f32 %v4755_v22, %v2896_v4  ;;  %v3635_v5 = vpop.f32.mrb[50].mxu1 }
 0x3b6   : > { %v2969_v6 = vadd.f32 %v3351_v32, %v2905_v42  ;;  %v2908_v17 = vadd.f32 %v3635_v5, %v4755_v22  ;;  %v2899_v11 = vpop.f32.mrb[51].mxu1 }
 0x3b7   : > { %v2967_v12 = vadd.f32 %v3347_v21, %v2897_v25  ;;  %v2900_v29 = vadd.f32 %v4755_v22, %v2899_v11 }
 0x3b8   : > { %v2985_v16 = vmax.f32 %v2969_v6, 0.0  ;;  %v2970_v2 = vadd.f32 %v3352_v59, %v2908_v17 }
 0x3b9   : > { %v2983_v19 = vmax.f32 %v2967_v12, 0.0  ;;  %v2968_v20 = vadd.f32 %v3348_v30, %v2900_v29 }
 0x3ba   : > { %3001 = vst [vmem:[%s4762_s12 + $0x50] sm:$0xff] %v2985_v16  ;;  %v2986_v15 = vmax.f32 %v2970_v2, 0.0 }
 0x3bb   : > { %2999 = vst [vmem:[%s4762_s12 + $0x40] sm:$0xff] %v2983_v19  ;;  %v2984_v24 = vmax.f32 %v2968_v20, 0.0 }
 0x3bc   : > { %3002 = vst [vmem:[%s4762_s12 + $0x58] sm:$0xff] %v2986_v15  ;;  %v3638_v57 = vpop.f32.mrb[52].mxu1 }
 0x3bd   : > { %3000 = vst [vmem:[%s4762_s12 + $0x48] sm:$0xff] %v2984_v24  ;;  %v2921_v13 = vadd.f32 %v3638_v57, %v4755_v22  ;;  %v2912_v34 = vpop.f32.mrb[53].mxu1 }
 0x3be   : > { %v2913_v23 = vadd.f32 %v4755_v22, %v2912_v34  ;;  %v3639_v35 = vpop.f32.mrb[54].mxu1 }
 0x3bf   : > { %v2973_v46 = vadd.f32 %v3359_v27, %v2921_v13  ;;  %v2924_v37 = vadd.f32 %v3639_v35, %v4755_v22  ;;  %v2915_v48 = vpop.f32.mrb[55].mxu1 }
 0x3c0   : > { %v2971_v14 = vadd.f32 %v3355_v31, %v2913_v23  ;;  %v2916_v39 = vadd.f32 %v4755_v22, %v2915_v48 }
 0x3c1   : > { %v2989_v10 = vmax.f32 %v2973_v46, 0.0  ;;  %v2974_v26 = vadd.f32 %v3360_v33, %v2924_v37 }
 0x3c2   : > { %v2987_v3 = vmax.f32 %v2971_v14, 0.0  ;;  %v2972_v53 = vadd.f32 %v3356_v36, %v2916_v39 }
 0x3c3   : > { %3005 = vst [vmem:[%s4762_s12 + $0x70] sm:$0xff] %v2989_v10  ;;  %v2990_v38 = vmax.f32 %v2974_v26, 0.0 }
 0x3c4   : > { %3003 = vst [vmem:[%s4762_s12 + $0x60] sm:$0xff] %v2987_v3  ;;  %v2988_v22 = vmax.f32 %v2972_v53, 0.0 }
 0x3c5   : > { %3006 = vst [vmem:[%s4762_s12 + $0x78] sm:$0xff] %v2990_v38 }
 0x3c6   : > { %3004 = vst [vmem:[%s4762_s12 + $0x68] sm:$0xff] %v2988_v22 }
 0x3c7   : > { %3968 = shalt.err (!%p3965_p4)
}
 0x3c8   : > { %s3969_s15 = scalar_lea.hbm %s4800_s11, 2048  ;;  %s3973_s8 = scalar_lea.hbm %s4856_s7, 4096 }
 0x3c9   : > { %p3970_p9 = scmp.ne.s32.totalorder %s4800_s11, %s3969_s15  ;;  %p3974_p8 = scmp.lt.u32.totalorder %s4800_s11, %s4856_s7 }
 0x3ca   : > { %p3975_p13 = scmp.lt.u32.totalorder %s3973_s8, %s3969_s15  ;;  %p3977_p10 = scmp.lt.u32.totalorder %s3969_s15, %s4800_s11 }
 0x3cb   : > { %p3971_p0 = pnand %p3970_p9, %p4234_p5 }
 0x3cc   : > { %p3976_p6 = por %p3975_p13, %p3974_p8 }
 0x3cd   : > { %p3972_p11 = pneg %p3971_p0 }
 0x3ce   : > { %p3978_p3 = por %p3977_p10, %p3976_p6 }
 0x3d0   : > { %p3979_p7 = pnand %p3978_p3, %p3972_p11 }
 0x3d2   : > { %3982 = shalt.err (!%p3979_p7)
}
 0x3d3   : > { %s4038_s29 = smov 128   ;;  %s4039_s23 = smov 8  }
 0x3d4   : > { %3670 = dma.vmem_to_hbm [thread:$0]  (%p4234_p5), %s4802_s16, 2048, %s4800_s11, %s3008_s28, %s4038_s29, %s4038_s29, %s4039_s23  }
 0x3d5 PF: > { %s4886_s20 = sld [smem:[#allocation16_spill]]  ;;  %s3037_s30 = sand.u32 1, %s4017_s24  }
 0x3d6   : > { %p4888_p1 = scmp.ge.s32.totalorder %s4029_s27, 2  ;;  %s3038_s9 = scalar_lea.sflag [#allocation5], %s3037_s30 }
 0x3db   : > { %p4887_p12 = scmp.ne.s32.totalorder %s4886_s20, 0 }
 0x3dd   : > { %p3687_p2 = pnand %p4888_p1, %p4887_p12 }
 0x3df   : > { %4012 = dma.done.wait (!%p3687_p2), %s3038_s9, 2048  }
 0x3e0   : > { %4014 = vsyncadd (!%p3687_p2), %s3038_s9, 4294965248  ;;  %p22_p4 = scmp.ge.s32.totalorder %s4220_s22, 4   ;;  %s4889_s24 = smov %s4021_s25 }
 0x3e1   : > { %s4890_s25 = smov %s4025_s26  ;;  %s4891_s26 = smov %s4230_s18 }
 0x3e2   : > { %s4892_s27 = smov %s4220_s22  ;;  %24 = sbr.rel (!%p22_p4) target bundleno = 7 (0x7), region = 105 }
 0x3e9   :  { %3043 = vsyncpa [#allocation4], 1 }
 0x3ea   :  { %3045 = vsyncpa [#allocation4 + $0x1], 1 }
 0x3eb   :  { %3046 = vsyncpa [#allocation7], 1 }
 0x3ec   :  { %3047 = vsyncpa [#allocation10], 1 }
 0x3ed   :  { %3048 = vsyncpa [#allocation5], 1 }
 0x3ee   :  { %3050 = vsyncpa [#allocation5 + $0x1], 1 }

</bundles_post_ra>
